<compile_context>
chip_gen: v7x
topology: tpu7x:2x2x1
jax: 0.10.0
libtpu: 0.0.40
codegen_flags: <defaults>
</compile_context>

<pallas_src>
import functools

import jax
import jax.numpy as jnp
from jax import lax
from jax.experimental import pallas as pl
from jax.experimental.pallas import tpu as pltpu


def _match_kv_kernel(h_ref, wk_ref, bk_ref, wv_ref, bv_ref, rh_ref, exp_ref,
                     w_ref, out_ref, v_scr, m_scr, c_scr):
    # h_ref : (tile_l, H) bf16         | wk/wv : (H, Ap) bf16 | bk/bv : (1, Ap) f32
    # rh_ref: (Ap, 128) f32 (head n -> lane n) | exp_ref: (128, Ap) bf16 indicator
    # w_ref : SMEM (2,) f32 = [w1, w2] | out_ref: (tile_l, Ap) f32
    # v_scr : (tile_l, Ap) f32 (V)     | m_scr : (tile_l, 128) f32 per-head mask
    # c_scr : (2, Ap) f32 carry of the last-two valid V vectors across seq tiles
    t = pl.program_id(1)

    h = h_ref[...]
    # bf16 MXU matmuls with f32 accumulation; bias + ReLU in f32.
    # TODO(synk): compute K in f32 if bit-faithful >0.5 decisions vs. an f32
    # PyTorch forward are required (bf16 h/wk can flip borderline masks).
    k = jnp.maximum(
        jnp.dot(h, wk_ref[...], preferred_element_type=jnp.float32) + bk_ref[...],
        0.0)
    v = jnp.maximum(
        jnp.dot(h, wv_ref[...], preferred_element_type=jnp.float32) + bv_ref[...],
        0.0)

    # Per-head selector dot (kept f32): dots[l, n] = <K[l, n*hd:(n+1)*hd], RH[n, :]>.
    dots = jnp.dot(k, rh_ref[...], preferred_element_type=jnp.float32)  # (tile_l, 128)
    m_scr[...] = (dots > 0.5).astype(jnp.float32)
    v_scr[...] = v

    tile_l, a_pad = out_ref.shape
    n_blocks = tile_l // 8                  # tile_l padded to a multiple of 8

    # Hoisted scalar->vector broadcasts of w1 / w2 (reused for every tile).
    w1b = jnp.full((1, a_pad), w_ref[0], jnp.float32)
    w2b = jnp.full((1, a_pad), w_ref[1], jnp.float32)

    # Carry init: tile 0 uses V[row 0] ("no valid position yet" == index 0);
    # later tiles continue from the previous tile's carry kept in c_scr.
    is_first = t == 0
    v_row0 = v[0:1, :]
    v0 = jnp.where(is_first, v_row0, c_scr[0:1, :])
    v1 = jnp.where(is_first, v_row0, c_scr[1:2, :])

    def body(blk, carry):
        v0, v1 = carry
        l0 = pl.multiple_of(blk * 8, 8)
        v_tile = v_scr[pl.ds(l0, 8), :]                                  # (8, Ap)
        msk = m_scr[pl.ds(l0, 8), :].astype(jnp.bfloat16)                # (8, 128)
        # Expand head-n mask over that head's hd lanes (bf16 MXU, 0/1 exact).
        m_tile = jnp.dot(msk, exp_ref[...],
                         preferred_element_type=jnp.float32) > 0.5       # (8, Ap)
        s0, s1 = [], []
        for i in range(8):                      # serial scan: selects only
            m = m_tile[i:i + 1, :]
            v1 = jnp.where(m, v0, v1)
            v0 = jnp.where(m, v_tile[i:i + 1, :], v0)
            s0.append(v0)
            s1.append(v1)
        # Weighted sum at (8, Ap) tile granularity -> full sublane occupancy.
        out_ref[pl.ds(l0, 8), :] = (jnp.concatenate(s0, axis=0) * w1b
                                    + jnp.concatenate(s1, axis=0) * w2b)
        return (v0, v1)

    v0, v1 = lax.fori_loop(0, n_blocks, body, (v0, v1),
                           unroll=True if n_blocks <= 8 else 4)
    # Persist the carry for the next sequence tile of this batch element.
    c_scr[0:1, :] = v0
    c_scr[1:2, :] = v1


def _pick_vmem_limit_bytes():
    # Per-generation scoped-VMEM limit: ~3/4 of physical, capped at 96 MiB
    # (v5e/v6e: 96 MiB, v7x: 48 MiB).  Conservative fallback if query fails.
    try:
        cap = int(pltpu.get_tpu_info().vmem_capacity_bytes)
    except Exception:
        return 48 * 1024 * 1024
    return max(32 * 1024 * 1024, min(cap * 3 // 4, 96 * 1024 * 1024))


@functools.lru_cache(maxsize=None)
def _build_call(bs, l_pad, tile_l, hidden, a_pad, single_buffer_consts):
    f32 = jnp.float32
    const_kw = dict(pipeline_mode=pl.Buffered(1)) if single_buffer_consts else {}
    n_tiles = l_pad // tile_l
    return pl.pallas_call(
        _match_kv_kernel,
        out_shape=jax.ShapeDtypeStruct((bs, l_pad, a_pad), f32),
        grid_spec=pltpu.PrefetchScalarGridSpec(
            num_scalar_prefetch=0,
            grid=(bs, n_tiles),
            in_specs=[
                pl.BlockSpec((None, tile_l, hidden), lambda b, t: (b, t, 0)),
                pl.BlockSpec((hidden, a_pad), lambda b, t: (0, 0), **const_kw),
                pl.BlockSpec((1, a_pad), lambda b, t: (0, 0), **const_kw),
                pl.BlockSpec((hidden, a_pad), lambda b, t: (0, 0), **const_kw),
                pl.BlockSpec((1, a_pad), lambda b, t: (0, 0), **const_kw),
                pl.BlockSpec((a_pad, 128), lambda b, t: (0, 0), **const_kw),
                pl.BlockSpec((128, a_pad), lambda b, t: (0, 0), **const_kw),
                pl.BlockSpec(memory_space=pltpu.MemorySpace.SMEM),
            ],
            out_specs=pl.BlockSpec((None, tile_l, a_pad), lambda b, t: (b, t, 0)),
            scratch_shapes=[
                pltpu.VMEM((tile_l, a_pad), f32),   # V
                pltpu.VMEM((tile_l, 128), f32),     # per-head valid mask (0/1)
                pltpu.VMEM((2, a_pad), f32),        # (v0, v1) cross-tile carry
            ],
        ),
        compiler_params=pltpu.CompilerParams(
            dimension_semantics=("parallel", "arbitrary"),
            vmem_limit_bytes=_pick_vmem_limit_bytes()),
    )


def prepare_matchkv_params(wk, bk, wv, bv, reading_head, w1, w2):
    """Pad / pack weights once, outside the per-call hot path."""
    hidden, all_head = wk.shape
    n_head, hd = reading_head.shape
    assert n_head * hd == all_head
    assert n_head <= 128, "selector lane packing assumes n_head <= 128"
    f32, bf16 = jnp.float32, jnp.bfloat16
    a_pad = ((all_head + 127) // 128) * 128       # lane-dense output width

    wk_p = jnp.zeros((hidden, a_pad), bf16).at[:, :all_head].set(wk.astype(bf16))
    wv_p = jnp.zeros((hidden, a_pad), bf16).at[:, :all_head].set(wv.astype(bf16))
    bk_p = jnp.zeros((1, a_pad), f32).at[0, :all_head].set(bk.astype(f32))
    bv_p = jnp.zeros((1, a_pad), f32).at[0, :all_head].set(bv.astype(f32))

    cols = jnp.arange(all_head)
    head_of = cols // hd
    # rh_big[n*hd + i, n] = ReadingHead[n, i]  ->  K @ rh_big puts head n's
    # reading-head dot product in lane n (padded to 128 lanes).
    rh_big = jnp.zeros((a_pad, 128), f32).at[cols, head_of].set(
        reading_head.reshape(-1).astype(f32))
    # expand[n, n*hd + j] = 1 (bf16, exact) -> replicates head-n mask over hd lanes.
    expand = jnp.zeros((128, a_pad), bf16).at[head_of, cols].set(1.0)

    w12 = jnp.concatenate([w1.reshape(-1), w2.reshape(-1)]).astype(f32)
    return dict(wk=wk_p, bk=bk_p, wv=wv_p, bv=bv_p, rh=rh_big, expand=expand,
                w12=w12, hidden=hidden, all_head=all_head, a_pad=a_pad)


_BUFFERED_OK = None   # decided on first call; True if pl.Buffered(1) compiles


def roberta_self_attention_matchkv(h, params):
    global _BUFFERED_OK
    bs, seq_len, hidden = h.shape
    assert hidden == params["hidden"]
    a_pad, all_head = params["a_pad"], params["all_head"]

    # Sequence tiling: one tile for short sequences, 512-row tiles otherwise.
    if seq_len <= 512:
        l_pad = ((seq_len + 7) // 8) * 8
        tile_l = l_pad
    else:
        tile_l = 512
        l_pad = ((seq_len + tile_l - 1) // tile_l) * tile_l

    bf16 = jnp.bfloat16
    if l_pad == seq_len:
        h_p = h.astype(bf16)                      # no extra padding pass over h
    else:
        # Padded rows come *after* all real rows (confined to the last tile), so
        # the forward scan over real positions is unaffected; padded outputs
        # (and padded lanes, whose weights are zero) are sliced off below.
        h_p = jnp.zeros((bs, l_pad, hidden), bf16).at[:, :seq_len, :].set(
            h.astype(bf16))

    args = (h_p, params["wk"], params["bk"], params["wv"], params["bv"],
            params["rh"], params["expand"], params["w12"])

    if _BUFFERED_OK is None:
        try:
            out = _build_call(bs, l_pad, tile_l, hidden, a_pad, True)(*args)
            out = jax.block_until_ready(out)
            _BUFFERED_OK = True
        except Exception:
            # Fallback for jax builds without BlockSpec(pipeline_mode=Buffered(1)).
            _BUFFERED_OK = False
            out = _build_call(bs, l_pad, tile_l, hidden, a_pad, False)(*args)
    else:
        out = _build_call(bs, l_pad, tile_l, hidden, a_pad, _BUFFERED_OK)(*args)

    return out[:, :seq_len, :all_head]


def _reference(h, wk, bk, wv, bv, reading_head, w1, w2):
    """Pure-JAX replica of the PyTorch forward (index tracking + gather).

    Uses the same bf16 casts for the projections as the kernel so that the
    >0.5 threshold decisions are made on identical numerics.
    """
    bs, L, _ = h.shape
    n_head, hd = reading_head.shape
    h_bf, wk_bf, wv_bf = (x.astype(jnp.bfloat16) for x in (h, wk, wv))
    k = jax.nn.relu(jnp.dot(h_bf, wk_bf, preferred_element_type=jnp.float32) + bk)
    v = jax.nn.relu(jnp.dot(h_bf, wv_bf, preferred_element_type=jnp.float32) + bv)
    k = k.reshape(bs, L, n_head, hd)
    v = v.reshape(bs, L, n_head, hd)
    dots = jnp.einsum('blnh,nh->bln', k, reading_head.astype(jnp.float32))
    valid = dots > 0.5

    def scan_fn(carry, inp):
        i0, i1 = carry                      # (bs, n_head) int32
        m, l = inp
        new_i1 = jnp.where(m, i0, i1)
        new_i0 = jnp.where(m, l, i0)
        return (new_i0, new_i1), (new_i0, new_i1)

    init = (jnp.zeros((bs, n_head), jnp.int32), jnp.zeros((bs, n_head), jnp.int32))
    _, (idx0, idx1) = lax.scan(
        scan_fn, init, (valid.transpose(1, 0, 2), jnp.arange(L, dtype=jnp.int32)))
    idx0 = idx0.transpose(1, 0, 2)          # (bs, L, n_head)
    idx1 = idx1.transpose(1, 0, 2)

    g0 = jnp.take_along_axis(v, idx0[..., None], axis=1)   # (bs, L, n_head, hd)
    g1 = jnp.take_along_axis(v, idx1[..., None], axis=1)
    out = g0 * w1[0] + g1 * w2[0]
    return out.reshape(bs, L, n_head * hd)


if __name__ == "__main__":
    bs, seq_len, hidden = 2, 8, 32
    n_head, hd = 4, 8
    all_head = n_head * hd

    key = jax.random.PRNGKey(0)
    ks = jax.random.split(key, 6)
    h = jax.random.normal(ks[0], (bs, seq_len, hidden), jnp.float32)
    wk = jax.random.normal(ks[1], (hidden, all_head), jnp.float32) / jnp.sqrt(hidden)
    bk = jax.random.normal(ks[2], (all_head,), jnp.float32) * 0.1
    wv = jax.random.normal(ks[3], (hidden, all_head), jnp.float32) / jnp.sqrt(hidden)
    bv = jax.random.normal(ks[4], (all_head,), jnp.float32) * 0.1
    xavier_std = (2.0 / (n_head + hd)) ** 0.5       # xavier_normal_ on ReadingHead
    reading_head = jax.random.normal(ks[5], (n_head, hd), jnp.float32) * xavier_std
    w1 = jnp.full((1,), 0.7, jnp.float32)
    w2 = jnp.full((1,), 0.3, jnp.float32)

    params = prepare_matchkv_params(wk, bk, wv, bv, reading_head, w1, w2)
    out = roberta_self_attention_matchkv(h, params)
    out = jax.block_until_ready(out)

    ref = _reference(h, wk, bk, wv, bv, reading_head, w1, w2)
    assert out.shape == (bs, seq_len, all_head)
    if not bool(jnp.allclose(out, ref, atol=5e-3, rtol=5e-3)):
        raise AssertionError("Pallas kernel output does not match JAX reference")
    print("KERNEL_OK")
</pallas_src>

<mosaic_0001>
module attributes {stable_mosaic.version = 11 : i64} {
  func.func @_match_kv_kernel(%arg0: i32, %arg1: i32, %arg2: memref<1x8x32xbf16, #tpu.memory_space<vmem>>, %arg3: memref<32x128xbf16, #tpu.memory_space<vmem>>, %arg4: memref<1x128xf32, #tpu.memory_space<vmem>>, %arg5: memref<32x128xbf16, #tpu.memory_space<vmem>>, %arg6: memref<1x128xf32, #tpu.memory_space<vmem>>, %arg7: memref<128x128xf32, #tpu.memory_space<vmem>>, %arg8: memref<128x128xbf16, #tpu.memory_space<vmem>>, %arg9: memref<2xf32, #tpu.memory_space<smem>>, %arg10: memref<1x8x128xf32, #tpu.memory_space<vmem>>, %arg11: memref<8x128xf32, #tpu.memory_space<vmem>>, %arg12: memref<8x128xf32, #tpu.memory_space<vmem>>, %arg13: memref<2x128xf32, #tpu.memory_space<vmem>>) attributes {dimension_semantics = [#tpu.dimension_semantics<parallel>, #tpu.dimension_semantics<arbitrary>], iteration_bounds = array<i64: 2, 1>, scalar_prefetch = 0 : i64, scratch_operands = 3 : i64, tpu.core_type = #tpu.core_type<tc>, window_params = [{transform_indices = @transform_0, window_bounds = array<i64: 1, 8, 32>}, {pipeline_mode = #tpu.pipeline_mode<synchronous>, transform_indices = @transform_1, window_bounds = array<i64: 32, 128>}, {pipeline_mode = #tpu.pipeline_mode<synchronous>, transform_indices = @transform_2, window_bounds = array<i64: 1, 128>}, {pipeline_mode = #tpu.pipeline_mode<synchronous>, transform_indices = @transform_3, window_bounds = array<i64: 32, 128>}, {pipeline_mode = #tpu.pipeline_mode<synchronous>, transform_indices = @transform_4, window_bounds = array<i64: 1, 128>}, {pipeline_mode = #tpu.pipeline_mode<synchronous>, transform_indices = @transform_5, window_bounds = array<i64: 128, 128>}, {pipeline_mode = #tpu.pipeline_mode<synchronous>, transform_indices = @transform_6, window_bounds = array<i64: 128, 128>}, {transform_indices = @transform_7, window_bounds = array<i64: 2>}, {transform_indices = @transform_8, window_bounds = array<i64: 1, 8, 128>}]} {
    %c0 = arith.constant 0 : index
    %c0_0 = arith.constant 0 : index
    %c0_1 = arith.constant 0 : index
    %0 = vector.load %arg2[%c0, %c0_0, %c0_1] : memref<1x8x32xbf16, #tpu.memory_space<vmem>>, vector<1x8x32xbf16>
    %1 = vector.shape_cast %0 : vector<1x8x32xbf16> to vector<8x32xbf16>
    %c0_2 = arith.constant 0 : index
    %c0_3 = arith.constant 0 : index
    %2 = vector.load %arg3[%c0_2, %c0_3] : memref<32x128xbf16, #tpu.memory_space<vmem>>, vector<32x128xbf16>
    %cst = arith.constant dense<0.000000e+00> : vector<8x128xf32>
    %3 = tpu.matmul %1, %2, %cst {dimension_numbers = #tpu.dot_dimension_numbers<[1], [0], [0], [1], [0, 0, 1, 1], [], []>} : vector<8x32xbf16>, vector<32x128xbf16>, vector<8x128xf32> -> vector<8x128xf32>
    %c0_4 = arith.constant 0 : index
    %c0_5 = arith.constant 0 : index
    %4 = vector.load %arg4[%c0_4, %c0_5] : memref<1x128xf32, #tpu.memory_space<vmem>>, vector<1x128xf32>
    %5 = vector.broadcast %4 : vector<1x128xf32> to vector<8x128xf32>
    %6 = arith.addf %3, %5 : vector<8x128xf32>
    %cst_6 = arith.constant 0.000000e+00 : f32
    %7 = vector.broadcast %cst_6 : f32 to vector<8x128xf32>
    %8 = arith.maximumf %6, %7 : vector<8x128xf32>
    %c0_7 = arith.constant 0 : index
    %c0_8 = arith.constant 0 : index
    %9 = vector.load %arg5[%c0_7, %c0_8] : memref<32x128xbf16, #tpu.memory_space<vmem>>, vector<32x128xbf16>
    %cst_9 = arith.constant dense<0.000000e+00> : vector<8x128xf32>
    %10 = tpu.matmul %1, %9, %cst_9 {dimension_numbers = #tpu.dot_dimension_numbers<[1], [0], [0], [1], [0, 0, 1, 1], [], []>} : vector<8x32xbf16>, vector<32x128xbf16>, vector<8x128xf32> -> vector<8x128xf32>
    %c0_10 = arith.constant 0 : index
    %c0_11 = arith.constant 0 : index
    %11 = vector.load %arg6[%c0_10, %c0_11] : memref<1x128xf32, #tpu.memory_space<vmem>>, vector<1x128xf32>
    %12 = vector.broadcast %11 : vector<1x128xf32> to vector<8x128xf32>
    %13 = arith.addf %10, %12 : vector<8x128xf32>
    %cst_12 = arith.constant 0.000000e+00 : f32
    %14 = vector.broadcast %cst_12 : f32 to vector<8x128xf32>
    %15 = arith.maximumf %13, %14 : vector<8x128xf32>
    %c0_13 = arith.constant 0 : index
    %c0_14 = arith.constant 0 : index
    %16 = vector.load %arg7[%c0_13, %c0_14] : memref<128x128xf32, #tpu.memory_space<vmem>>, vector<128x128xf32>
    %cst_15 = arith.constant dense<0.000000e+00> : vector<8x128xf32>
    %17 = tpu.matmul %8, %16, %cst_15 {dimension_numbers = #tpu.dot_dimension_numbers<[1], [0], [0], [1], [0, 0, 1, 1], [], []>} : vector<8x128xf32>, vector<128x128xf32>, vector<8x128xf32> -> vector<8x128xf32>
    %cst_16 = arith.constant 5.000000e-01 : f32
    %18 = vector.broadcast %cst_16 : f32 to vector<8x128xf32>
    %19 = arith.cmpf ogt, %17, %18 : vector<8x128xf32>
    %20 = arith.extui %19 : vector<8x128xi1> to vector<8x128xi32>
    %21 = arith.sitofp %20 : vector<8x128xi32> to vector<8x128xf32>
    %c0_17 = arith.constant 0 : index
    %c0_18 = arith.constant 0 : index
    %22 = vector.load %arg12[%c0_17, %c0_18] : memref<8x128xf32, #tpu.memory_space<vmem>>, vector<8x128xf32>
    tpu.vector_store %arg12[%c0_17, %c0_18], %21 {strides = array<i32>} : memref<8x128xf32, #tpu.memory_space<vmem>>, vector<8x128xf32>,
    %c0_19 = arith.constant 0 : index
    %c0_20 = arith.constant 0 : index
    %23 = vector.load %arg11[%c0_19, %c0_20] : memref<8x128xf32, #tpu.memory_space<vmem>>, vector<8x128xf32>
    tpu.vector_store %arg11[%c0_19, %c0_20], %15 {strides = array<i32>} : memref<8x128xf32, #tpu.memory_space<vmem>>, vector<8x128xf32>,
    %c0_21 = arith.constant 0 : index
    %24 = memref.load %arg9[%c0_21] : memref<2xf32, #tpu.memory_space<smem>>
    %25 = vector.broadcast %24 : f32 to vector<1x128xf32>
    %c1 = arith.constant 1 : index
    %26 = memref.load %arg9[%c1] : memref<2xf32, #tpu.memory_space<smem>>
    %27 = vector.broadcast %26 : f32 to vector<1x128xf32>
    %c0_i32 = arith.constant 0 : i32
    %28 = arith.cmpi eq, %arg1, %c0_i32 : i32
    %29 = vector.extract_strided_slice %15 {offsets = [0, 0], sizes = [1, 128], strides = [1, 1]} : vector<8x128xf32> to vector<1x128xf32>
    %c0_22 = arith.constant 0 : index
    %c0_23 = arith.constant 0 : index
    %30 = vector.load %arg13[%c0_22, %c0_23] : memref<2x128xf32, #tpu.memory_space<vmem>>, vector<1x128xf32>
    %31 = arith.select %28, %29, %30 : vector<1x128xf32>
    %c1_24 = arith.constant 1 : index
    %c0_25 = arith.constant 0 : index
    %32 = vector.load %arg13[%c1_24, %c0_25] : memref<2x128xf32, #tpu.memory_space<vmem>>, vector<1x128xf32>
    %33 = arith.select %28, %29, %32 : vector<1x128xf32>
    %c0_i32_26 = arith.constant 0 : i32
    %c8_i32 = arith.constant 8 : i32
    %34 = arith.muli %c0_i32_26, %c8_i32 : i32
    %35 = tpu.assume_multiple %34, 8 : i32
    %36 = arith.index_cast %35 : i32 to index
    %c0_27 = arith.constant 0 : index
    %37 = vector.load %arg11[%36, %c0_27] : memref<8x128xf32, #tpu.memory_space<vmem>>, vector<8x128xf32>
    %38 = arith.index_cast %35 : i32 to index
    %c0_28 = arith.constant 0 : index
    %39 = vector.load %arg12[%38, %c0_28] : memref<8x128xf32, #tpu.memory_space<vmem>>, vector<8x128xf32>
    %40 = arith.truncf %39 : vector<8x128xf32> to vector<8x128xbf16>
    %c0_29 = arith.constant 0 : index
    %c0_30 = arith.constant 0 : index
    %41 = vector.load %arg8[%c0_29, %c0_30] : memref<128x128xbf16, #tpu.memory_space<vmem>>, vector<128x128xbf16>
    %cst_31 = arith.constant dense<0.000000e+00> : vector<8x128xf32>
    %42 = tpu.matmul %40, %41, %cst_31 {dimension_numbers = #tpu.dot_dimension_numbers<[1], [0], [0], [1], [0, 0, 1, 1], [], []>} : vector<8x128xbf16>, vector<128x128xbf16>, vector<8x128xf32> -> vector<8x128xf32>
    %cst_32 = arith.constant 5.000000e-01 : f32
    %43 = vector.broadcast %cst_32 : f32 to vector<8x128xf32>
    %44 = arith.cmpf ogt, %42, %43 : vector<8x128xf32>
    %45 = vector.extract_strided_slice %44 {offsets = [0, 0], sizes = [1, 128], strides = [1, 1]} : vector<8x128xi1> to vector<1x128xi1>
    %46 = arith.select %45, %31, %33 : vector<1x128xi1>, vector<1x128xf32>
    %47 = vector.extract_strided_slice %37 {offsets = [0, 0], sizes = [1, 128], strides = [1, 1]} : vector<8x128xf32> to vector<1x128xf32>
    %48 = arith.select %45, %47, %31 : vector<1x128xi1>, vector<1x128xf32>
    %49 = vector.extract_strided_slice %44 {offsets = [1, 0], sizes = [1, 128], strides = [1, 1]} : vector<8x128xi1> to vector<1x128xi1>
    %50 = arith.select %49, %48, %46 : vector<1x128xi1>, vector<1x128xf32>
    %51 = vector.extract_strided_slice %37 {offsets = [1, 0], sizes = [1, 128], strides = [1, 1]} : vector<8x128xf32> to vector<1x128xf32>
    %52 = arith.select %49, %51, %48 : vector<1x128xi1>, vector<1x128xf32>
    %53 = vector.extract_strided_slice %44 {offsets = [2, 0], sizes = [1, 128], strides = [1, 1]} : vector<8x128xi1> to vector<1x128xi1>
    %54 = arith.select %53, %52, %50 : vector<1x128xi1>, vector<1x128xf32>
    %55 = vector.extract_strided_slice %37 {offsets = [2, 0], sizes = [1, 128], strides = [1, 1]} : vector<8x128xf32> to vector<1x128xf32>
    %56 = arith.select %53, %55, %52 : vector<1x128xi1>, vector<1x128xf32>
    %57 = vector.extract_strided_slice %44 {offsets = [3, 0], sizes = [1, 128], strides = [1, 1]} : vector<8x128xi1> to vector<1x128xi1>
    %58 = arith.select %57, %56, %54 : vector<1x128xi1>, vector<1x128xf32>
    %59 = vector.extract_strided_slice %37 {offsets = [3, 0], sizes = [1, 128], strides = [1, 1]} : vector<8x128xf32> to vector<1x128xf32>
    %60 = arith.select %57, %59, %56 : vector<1x128xi1>, vector<1x128xf32>
    %61 = vector.extract_strided_slice %44 {offsets = [4, 0], sizes = [1, 128], strides = [1, 1]} : vector<8x128xi1> to vector<1x128xi1>
    %62 = arith.select %61, %60, %58 : vector<1x128xi1>, vector<1x128xf32>
    %63 = vector.extract_strided_slice %37 {offsets = [4, 0], sizes = [1, 128], strides = [1, 1]} : vector<8x128xf32> to vector<1x128xf32>
    %64 = arith.select %61, %63, %60 : vector<1x128xi1>, vector<1x128xf32>
    %65 = vector.extract_strided_slice %44 {offsets = [5, 0], sizes = [1, 128], strides = [1, 1]} : vector<8x128xi1> to vector<1x128xi1>
    %66 = arith.select %65, %64, %62 : vector<1x128xi1>, vector<1x128xf32>
    %67 = vector.extract_strided_slice %37 {offsets = [5, 0], sizes = [1, 128], strides = [1, 1]} : vector<8x128xf32> to vector<1x128xf32>
    %68 = arith.select %65, %67, %64 : vector<1x128xi1>, vector<1x128xf32>
    %69 = vector.extract_strided_slice %44 {offsets = [6, 0], sizes = [1, 128], strides = [1, 1]} : vector<8x128xi1> to vector<1x128xi1>
    %70 = arith.select %69, %68, %66 : vector<1x128xi1>, vector<1x128xf32>
    %71 = vector.extract_strided_slice %37 {offsets = [6, 0], sizes = [1, 128], strides = [1, 1]} : vector<8x128xf32> to vector<1x128xf32>
    %72 = arith.select %69, %71, %68 : vector<1x128xi1>, vector<1x128xf32>
    %73 = vector.extract_strided_slice %44 {offsets = [7, 0], sizes = [1, 128], strides = [1, 1]} : vector<8x128xi1> to vector<1x128xi1>
    %74 = arith.select %73, %72, %70 : vector<1x128xi1>, vector<1x128xf32>
    %75 = vector.extract_strided_slice %37 {offsets = [7, 0], sizes = [1, 128], strides = [1, 1]} : vector<8x128xf32> to vector<1x128xf32>
    %76 = arith.select %73, %75, %72 : vector<1x128xi1>, vector<1x128xf32>
    %77 = tpu.concatenate %48, %52, %56, %60, %64, %68, %72, %76 in 0 : vector<1x128xf32>, vector<1x128xf32>, vector<1x128xf32>, vector<1x128xf32>, vector<1x128xf32>, vector<1x128xf32>, vector<1x128xf32>, vector<1x128xf32> -> vector<8x128xf32>
    %78 = vector.broadcast %25 : vector<1x128xf32> to vector<8x128xf32>
    %79 = arith.mulf %77, %78 : vector<8x128xf32>
    %80 = tpu.concatenate %46, %50, %54, %58, %62, %66, %70, %74 in 0 : vector<1x128xf32>, vector<1x128xf32>, vector<1x128xf32>, vector<1x128xf32>, vector<1x128xf32>, vector<1x128xf32>, vector<1x128xf32>, vector<1x128xf32> -> vector<8x128xf32>
    %81 = vector.broadcast %27 : vector<1x128xf32> to vector<8x128xf32>
    %82 = arith.mulf %80, %81 : vector<8x128xf32>
    %83 = arith.addf %79, %82 : vector<8x128xf32>
    %c0_33 = arith.constant 0 : index
    %84 = arith.index_cast %35 : i32 to index
    %c0_34 = arith.constant 0 : index
    %85 = vector.load %arg10[%c0_33, %84, %c0_34] : memref<1x8x128xf32, #tpu.memory_space<vmem>>, vector<1x8x128xf32>
    %86 = vector.shape_cast %85 : vector<1x8x128xf32> to vector<8x128xf32>
    %87 = vector.shape_cast %83 : vector<8x128xf32> to vector<1x8x128xf32>
    tpu.vector_store %arg10[%c0_33, %84, %c0_34], %87 {strides = array<i32>} : memref<1x8x128xf32, #tpu.memory_space<vmem>>, vector<1x8x128xf32>,
    %c1_i32 = arith.constant 1 : i32
    %c0_35 = arith.constant 0 : index
    %c0_36 = arith.constant 0 : index
    %88 = vector.load %arg13[%c0_35, %c0_36] : memref<2x128xf32, #tpu.memory_space<vmem>>, vector<1x128xf32>
    tpu.vector_store %arg13[%c0_35, %c0_36], %76 {strides = array<i32>} : memref<2x128xf32, #tpu.memory_space<vmem>>, vector<1x128xf32>,
    %c1_37 = arith.constant 1 : index
    %c0_38 = arith.constant 0 : index
    %89 = vector.load %arg13[%c1_37, %c0_38] : memref<2x128xf32, #tpu.memory_space<vmem>>, vector<1x128xf32>
    tpu.vector_store %arg13[%c1_37, %c0_38], %74 {strides = array<i32>} : memref<2x128xf32, #tpu.memory_space<vmem>>, vector<1x128xf32>,
    return
  }
  func.func @transform_0(%arg0: i32, %arg1: i32) -> (i32, i32, i32) {
    %c0_i32 = arith.constant 0 : i32
    %c0_i32_0 = arith.constant 0 : i32
    return %arg0, %arg1, %c0_i32 : i32, i32, i32
  }
  func.func @transform_1(%arg0: i32, %arg1: i32) -> (i32, i32) {
    %c0_i32 = arith.constant 0 : i32
    %c0_i32_0 = arith.constant 0 : i32
    %c0_i32_1 = arith.constant 0 : i32
    return %c0_i32, %c0_i32_0 : i32, i32
  }
  func.func @transform_2(%arg0: i32, %arg1: i32) -> (i32, i32) {
    %c0_i32 = arith.constant 0 : i32
    %c0_i32_0 = arith.constant 0 : i32
    %c0_i32_1 = arith.constant 0 : i32
    return %c0_i32, %c0_i32_0 : i32, i32
  }
  func.func @transform_3(%arg0: i32, %arg1: i32) -> (i32, i32) {
    %c0_i32 = arith.constant 0 : i32
    %c0_i32_0 = arith.constant 0 : i32
    %c0_i32_1 = arith.constant 0 : i32
    return %c0_i32, %c0_i32_0 : i32, i32
  }
  func.func @transform_4(%arg0: i32, %arg1: i32) -> (i32, i32) {
    %c0_i32 = arith.constant 0 : i32
    %c0_i32_0 = arith.constant 0 : i32
    %c0_i32_1 = arith.constant 0 : i32
    return %c0_i32, %c0_i32_0 : i32, i32
  }
  func.func @transform_5(%arg0: i32, %arg1: i32) -> (i32, i32) {
    %c0_i32 = arith.constant 0 : i32
    %c0_i32_0 = arith.constant 0 : i32
    %c0_i32_1 = arith.constant 0 : i32
    return %c0_i32, %c0_i32_0 : i32, i32
  }
  func.func @transform_6(%arg0: i32, %arg1: i32) -> (i32, i32) {
    %c0_i32 = arith.constant 0 : i32
    %c0_i32_0 = arith.constant 0 : i32
    %c0_i32_1 = arith.constant 0 : i32
    return %c0_i32, %c0_i32_0 : i32, i32
  }
  func.func @transform_7(%arg0: i32, %arg1: i32) -> i32 {
    %c0_i32 = arith.constant 0 : i32
    %c0_i32_0 = arith.constant 0 : i32
    return %c0_i32 : i32
  }
  func.func @transform_8(%arg0: i32, %arg1: i32) -> (i32, i32, i32) {
    %c0_i32 = arith.constant 0 : i32
    %c0_i32_0 = arith.constant 0 : i32
    return %arg0, %arg1, %c0_i32 : i32, i32, i32
  }
}

module attributes {stable_mosaic.version = 11 : i64} {
  func.func @_match_kv_kernel(%arg0: i32, %arg1: i32, %arg2: memref<1x8x32xbf16, #tpu.memory_space<vmem>>, %arg3: memref<32x128xbf16, #tpu.memory_space<vmem>>, %arg4: memref<1x128xf32, #tpu.memory_space<vmem>>, %arg5: memref<32x128xbf16, #tpu.memory_space<vmem>>, %arg6: memref<1x128xf32, #tpu.memory_space<vmem>>, %arg7: memref<128x128xf32, #tpu.memory_space<vmem>>, %arg8: memref<128x128xbf16, #tpu.memory_space<vmem>>, %arg9: memref<2xf32, #tpu.memory_space<smem>>, %arg10: memref<1x8x128xf32, #tpu.memory_space<vmem>>, %arg11: memref<8x128xf32, #tpu.memory_space<vmem>>, %arg12: memref<8x128xf32, #tpu.memory_space<vmem>>, %arg13: memref<2x128xf32, #tpu.memory_space<vmem>>) attributes {dimension_semantics = [#tpu.dimension_semantics<parallel>, #tpu.dimension_semantics<arbitrary>], iteration_bounds = array<i64: 2, 1>, scalar_prefetch = 0 : i64, scratch_operands = 3 : i64, tpu.core_type = #tpu.core_type<tc>, window_params = [{transform_indices = @transform_0, window_bounds = array<i64: 1, 8, 32>}, {pipeline_mode = #tpu.pipeline_mode<synchronous>, transform_indices = @transform_1, window_bounds = array<i64: 32, 128>}, {pipeline_mode = #tpu.pipeline_mode<synchronous>, transform_indices = @transform_2, window_bounds = array<i64: 1, 128>}, {pipeline_mode = #tpu.pipeline_mode<synchronous>, transform_indices = @transform_3, window_bounds = array<i64: 32, 128>}, {pipeline_mode = #tpu.pipeline_mode<synchronous>, transform_indices = @transform_4, window_bounds = array<i64: 1, 128>}, {pipeline_mode = #tpu.pipeline_mode<synchronous>, transform_indices = @transform_5, window_bounds = array<i64: 128, 128>}, {pipeline_mode = #tpu.pipeline_mode<synchronous>, transform_indices = @transform_6, window_bounds = array<i64: 128, 128>}, {transform_indices = @transform_7, window_bounds = array<i64: 2>}, {transform_indices = @transform_8, window_bounds = array<i64: 1, 8, 128>}]} {
    %c0 = arith.constant 0 : index
    %c0_0 = arith.constant 0 : index
    %c0_1 = arith.constant 0 : index
    %0 = vector.load %arg2[%c0, %c0_0, %c0_1] : memref<1x8x32xbf16, #tpu.memory_space<vmem>>, vector<1x8x32xbf16>
    %1 = vector.shape_cast %0 : vector<1x8x32xbf16> to vector<8x32xbf16>
    %c0_2 = arith.constant 0 : index
    %c0_3 = arith.constant 0 : index
    %2 = vector.load %arg3[%c0_2, %c0_3] : memref<32x128xbf16, #tpu.memory_space<vmem>>, vector<32x128xbf16>
    %cst = arith.constant dense<0.000000e+00> : vector<8x128xf32>
    %3 = tpu.matmul %1, %2, %cst {dimension_numbers = #tpu.dot_dimension_numbers<[1], [0], [0], [1], [0, 0, 1, 1], [], []>} : vector<8x32xbf16>, vector<32x128xbf16>, vector<8x128xf32> -> vector<8x128xf32>
    %c0_4 = arith.constant 0 : index
    %c0_5 = arith.constant 0 : index
    %4 = vector.load %arg4[%c0_4, %c0_5] : memref<1x128xf32, #tpu.memory_space<vmem>>, vector<1x128xf32>
    %5 = vector.broadcast %4 : vector<1x128xf32> to vector<8x128xf32>
    %6 = arith.addf %3, %5 : vector<8x128xf32>
    %cst_6 = arith.constant 0.000000e+00 : f32
    %7 = vector.broadcast %cst_6 : f32 to vector<8x128xf32>
    %8 = arith.maximumf %6, %7 : vector<8x128xf32>
    %c0_7 = arith.constant 0 : index
    %c0_8 = arith.constant 0 : index
    %9 = vector.load %arg5[%c0_7, %c0_8] : memref<32x128xbf16, #tpu.memory_space<vmem>>, vector<32x128xbf16>
    %cst_9 = arith.constant dense<0.000000e+00> : vector<8x128xf32>
    %10 = tpu.matmul %1, %9, %cst_9 {dimension_numbers = #tpu.dot_dimension_numbers<[1], [0], [0], [1], [0, 0, 1, 1], [], []>} : vector<8x32xbf16>, vector<32x128xbf16>, vector<8x128xf32> -> vector<8x128xf32>
    %c0_10 = arith.constant 0 : index
    %c0_11 = arith.constant 0 : index
    %11 = vector.load %arg6[%c0_10, %c0_11] : memref<1x128xf32, #tpu.memory_space<vmem>>, vector<1x128xf32>
    %12 = vector.broadcast %11 : vector<1x128xf32> to vector<8x128xf32>
    %13 = arith.addf %10, %12 : vector<8x128xf32>
    %cst_12 = arith.constant 0.000000e+00 : f32
    %14 = vector.broadcast %cst_12 : f32 to vector<8x128xf32>
    %15 = arith.maximumf %13, %14 : vector<8x128xf32>
    %c0_13 = arith.constant 0 : index
    %c0_14 = arith.constant 0 : index
    %16 = vector.load %arg7[%c0_13, %c0_14] : memref<128x128xf32, #tpu.memory_space<vmem>>, vector<128x128xf32>
    %cst_15 = arith.constant dense<0.000000e+00> : vector<8x128xf32>
    %17 = tpu.matmul %8, %16, %cst_15 {dimension_numbers = #tpu.dot_dimension_numbers<[1], [0], [0], [1], [0, 0, 1, 1], [], []>} : vector<8x128xf32>, vector<128x128xf32>, vector<8x128xf32> -> vector<8x128xf32>
    %cst_16 = arith.constant 5.000000e-01 : f32
    %18 = vector.broadcast %cst_16 : f32 to vector<8x128xf32>
    %19 = arith.cmpf ogt, %17, %18 : vector<8x128xf32>
    %20 = arith.extui %19 : vector<8x128xi1> to vector<8x128xi32>
    %21 = arith.sitofp %20 : vector<8x128xi32> to vector<8x128xf32>
    %c0_17 = arith.constant 0 : index
    %c0_18 = arith.constant 0 : index
    %22 = vector.load %arg12[%c0_17, %c0_18] : memref<8x128xf32, #tpu.memory_space<vmem>>, vector<8x128xf32>
    tpu.vector_store %arg12[%c0_17, %c0_18], %21 {strides = array<i32>} : memref<8x128xf32, #tpu.memory_space<vmem>>, vector<8x128xf32>,
    %c0_19 = arith.constant 0 : index
    %c0_20 = arith.constant 0 : index
    %23 = vector.load %arg11[%c0_19, %c0_20] : memref<8x128xf32, #tpu.memory_space<vmem>>, vector<8x128xf32>
    tpu.vector_store %arg11[%c0_19, %c0_20], %15 {strides = array<i32>} : memref<8x128xf32, #tpu.memory_space<vmem>>, vector<8x128xf32>,
    %c0_21 = arith.constant 0 : index
    %24 = memref.load %arg9[%c0_21] : memref<2xf32, #tpu.memory_space<smem>>
    %25 = vector.broadcast %24 : f32 to vector<1x128xf32>
    %c1 = arith.constant 1 : index
    %26 = memref.load %arg9[%c1] : memref<2xf32, #tpu.memory_space<smem>>
    %27 = vector.broadcast %26 : f32 to vector<1x128xf32>
    %c0_i32 = arith.constant 0 : i32
    %28 = arith.cmpi eq, %arg1, %c0_i32 : i32
    %29 = vector.extract_strided_slice %15 {offsets = [0, 0], sizes = [1, 128], strides = [1, 1]} : vector<8x128xf32> to vector<1x128xf32>
    %c0_22 = arith.constant 0 : index
    %c0_23 = arith.constant 0 : index
    %30 = vector.load %arg13[%c0_22, %c0_23] : memref<2x128xf32, #tpu.memory_space<vmem>>, vector<1x128xf32>
    %31 = arith.select %28, %29, %30 : vector<1x128xf32>
    %c1_24 = arith.constant 1 : index
    %c0_25 = arith.constant 0 : index
    %32 = vector.load %arg13[%c1_24, %c0_25] : memref<2x128xf32, #tpu.memory_space<vmem>>, vector<1x128xf32>
    %33 = arith.select %28, %29, %32 : vector<1x128xf32>
    %c0_i32_26 = arith.constant 0 : i32
    %c8_i32 = arith.constant 8 : i32
    %34 = arith.muli %c0_i32_26, %c8_i32 : i32
    %35 = tpu.assume_multiple %34, 8 : i32
    %36 = arith.index_cast %35 : i32 to index
    %c0_27 = arith.constant 0 : index
    %37 = vector.load %arg11[%36, %c0_27] : memref<8x128xf32, #tpu.memory_space<vmem>>, vector<8x128xf32>
    %38 = arith.index_cast %35 : i32 to index
    %c0_28 = arith.constant 0 : index
    %39 = vector.load %arg12[%38, %c0_28] : memref<8x128xf32, #tpu.memory_space<vmem>>, vector<8x128xf32>
    %40 = arith.truncf %39 : vector<8x128xf32> to vector<8x128xbf16>
    %c0_29 = arith.constant 0 : index
    %c0_30 = arith.constant 0 : index
    %41 = vector.load %arg8[%c0_29, %c0_30] : memref<128x128xbf16, #tpu.memory_space<vmem>>, vector<128x128xbf16>
    %cst_31 = arith.constant dense<0.000000e+00> : vector<8x128xf32>
    %42 = tpu.matmul %40, %41, %cst_31 {dimension_numbers = #tpu.dot_dimension_numbers<[1], [0], [0], [1], [0, 0, 1, 1], [], []>} : vector<8x128xbf16>, vector<128x128xbf16>, vector<8x128xf32> -> vector<8x128xf32>
    %cst_32 = arith.constant 5.000000e-01 : f32
    %43 = vector.broadcast %cst_32 : f32 to vector<8x128xf32>
    %44 = arith.cmpf ogt, %42, %43 : vector<8x128xf32>
    %45 = vector.extract_strided_slice %44 {offsets = [0, 0], sizes = [1, 128], strides = [1, 1]} : vector<8x128xi1> to vector<1x128xi1>
    %46 = arith.select %45, %31, %33 : vector<1x128xi1>, vector<1x128xf32>
    %47 = vector.extract_strided_slice %37 {offsets = [0, 0], sizes = [1, 128], strides = [1, 1]} : vector<8x128xf32> to vector<1x128xf32>
    %48 = arith.select %45, %47, %31 : vector<1x128xi1>, vector<1x128xf32>
    %49 = vector.extract_strided_slice %44 {offsets = [1, 0], sizes = [1, 128], strides = [1, 1]} : vector<8x128xi1> to vector<1x128xi1>
    %50 = arith.select %49, %48, %46 : vector<1x128xi1>, vector<1x128xf32>
    %51 = vector.extract_strided_slice %37 {offsets = [1, 0], sizes = [1, 128], strides = [1, 1]} : vector<8x128xf32> to vector<1x128xf32>
    %52 = arith.select %49, %51, %48 : vector<1x128xi1>, vector<1x128xf32>
    %53 = vector.extract_strided_slice %44 {offsets = [2, 0], sizes = [1, 128], strides = [1, 1]} : vector<8x128xi1> to vector<1x128xi1>
    %54 = arith.select %53, %52, %50 : vector<1x128xi1>, vector<1x128xf32>
    %55 = vector.extract_strided_slice %37 {offsets = [2, 0], sizes = [1, 128], strides = [1, 1]} : vector<8x128xf32> to vector<1x128xf32>
    %56 = arith.select %53, %55, %52 : vector<1x128xi1>, vector<1x128xf32>
    %57 = vector.extract_strided_slice %44 {offsets = [3, 0], sizes = [1, 128], strides = [1, 1]} : vector<8x128xi1> to vector<1x128xi1>
    %58 = arith.select %57, %56, %54 : vector<1x128xi1>, vector<1x128xf32>
    %59 = vector.extract_strided_slice %37 {offsets = [3, 0], sizes = [1, 128], strides = [1, 1]} : vector<8x128xf32> to vector<1x128xf32>
    %60 = arith.select %57, %59, %56 : vector<1x128xi1>, vector<1x128xf32>
    %61 = vector.extract_strided_slice %44 {offsets = [4, 0], sizes = [1, 128], strides = [1, 1]} : vector<8x128xi1> to vector<1x128xi1>
    %62 = arith.select %61, %60, %58 : vector<1x128xi1>, vector<1x128xf32>
    %63 = vector.extract_strided_slice %37 {offsets = [4, 0], sizes = [1, 128], strides = [1, 1]} : vector<8x128xf32> to vector<1x128xf32>
    %64 = arith.select %61, %63, %60 : vector<1x128xi1>, vector<1x128xf32>
    %65 = vector.extract_strided_slice %44 {offsets = [5, 0], sizes = [1, 128], strides = [1, 1]} : vector<8x128xi1> to vector<1x128xi1>
    %66 = arith.select %65, %64, %62 : vector<1x128xi1>, vector<1x128xf32>
    %67 = vector.extract_strided_slice %37 {offsets = [5, 0], sizes = [1, 128], strides = [1, 1]} : vector<8x128xf32> to vector<1x128xf32>
    %68 = arith.select %65, %67, %64 : vector<1x128xi1>, vector<1x128xf32>
    %69 = vector.extract_strided_slice %44 {offsets = [6, 0], sizes = [1, 128], strides = [1, 1]} : vector<8x128xi1> to vector<1x128xi1>
    %70 = arith.select %69, %68, %66 : vector<1x128xi1>, vector<1x128xf32>
    %71 = vector.extract_strided_slice %37 {offsets = [6, 0], sizes = [1, 128], strides = [1, 1]} : vector<8x128xf32> to vector<1x128xf32>
    %72 = arith.select %69, %71, %68 : vector<1x128xi1>, vector<1x128xf32>
    %73 = vector.extract_strided_slice %44 {offsets = [7, 0], sizes = [1, 128], strides = [1, 1]} : vector<8x128xi1> to vector<1x128xi1>
    %74 = arith.select %73, %72, %70 : vector<1x128xi1>, vector<1x128xf32>
    %75 = vector.extract_strided_slice %37 {offsets = [7, 0], sizes = [1, 128], strides = [1, 1]} : vector<8x128xf32> to vector<1x128xf32>
    %76 = arith.select %73, %75, %72 : vector<1x128xi1>, vector<1x128xf32>
    %77 = tpu.concatenate %48, %52, %56, %60, %64, %68, %72, %76 in 0 : vector<1x128xf32>, vector<1x128xf32>, vector<1x128xf32>, vector<1x128xf32>, vector<1x128xf32>, vector<1x128xf32>, vector<1x128xf32>, vector<1x128xf32> -> vector<8x128xf32>
    %78 = vector.broadcast %25 : vector<1x128xf32> to vector<8x128xf32>
    %79 = arith.mulf %77, %78 : vector<8x128xf32>
    %80 = tpu.concatenate %46, %50, %54, %58, %62, %66, %70, %74 in 0 : vector<1x128xf32>, vector<1x128xf32>, vector<1x128xf32>, vector<1x128xf32>, vector<1x128xf32>, vector<1x128xf32>, vector<1x128xf32>, vector<1x128xf32> -> vector<8x128xf32>
    %81 = vector.broadcast %27 : vector<1x128xf32> to vector<8x128xf32>
    %82 = arith.mulf %80, %81 : vector<8x128xf32>
    %83 = arith.addf %79, %82 : vector<8x128xf32>
    %c0_33 = arith.constant 0 : index
    %84 = arith.index_cast %35 : i32 to index
    %c0_34 = arith.constant 0 : index
    %85 = vector.load %arg10[%c0_33, %84, %c0_34] : memref<1x8x128xf32, #tpu.memory_space<vmem>>, vector<1x8x128xf32>
    %86 = vector.shape_cast %85 : vector<1x8x128xf32> to vector<8x128xf32>
    %87 = vector.shape_cast %83 : vector<8x128xf32> to vector<1x8x128xf32>
    tpu.vector_store %arg10[%c0_33, %84, %c0_34], %87 {strides = array<i32>} : memref<1x8x128xf32, #tpu.memory_space<vmem>>, vector<1x8x128xf32>,
    %c1_i32 = arith.constant 1 : i32
    %c0_35 = arith.constant 0 : index
    %c0_36 = arith.constant 0 : index
    %88 = vector.load %arg13[%c0_35, %c0_36] : memref<2x128xf32, #tpu.memory_space<vmem>>, vector<1x128xf32>
    tpu.vector_store %arg13[%c0_35, %c0_36], %76 {strides = array<i32>} : memref<2x128xf32, #tpu.memory_space<vmem>>, vector<1x128xf32>,
    %c1_37 = arith.constant 1 : index
    %c0_38 = arith.constant 0 : index
    %89 = vector.load %arg13[%c1_37, %c0_38] : memref<2x128xf32, #tpu.memory_space<vmem>>, vector<1x128xf32>
    tpu.vector_store %arg13[%c1_37, %c0_38], %74 {strides = array<i32>} : memref<2x128xf32, #tpu.memory_space<vmem>>, vector<1x128xf32>,
    return
  }
  func.func @transform_0(%arg0: i32, %arg1: i32) -> (i32, i32, i32) {
    %c0_i32 = arith.constant 0 : i32
    %c0_i32_0 = arith.constant 0 : i32
    return %arg0, %arg1, %c0_i32 : i32, i32, i32
  }
  func.func @transform_1(%arg0: i32, %arg1: i32) -> (i32, i32) {
    %c0_i32 = arith.constant 0 : i32
    %c0_i32_0 = arith.constant 0 : i32
    %c0_i32_1 = arith.constant 0 : i32
    return %c0_i32, %c0_i32_0 : i32, i32
  }
  func.func @transform_2(%arg0: i32, %arg1: i32) -> (i32, i32) {
    %c0_i32 = arith.constant 0 : i32
    %c0_i32_0 = arith.constant 0 : i32
    %c0_i32_1 = arith.constant 0 : i32
    return %c0_i32, %c0_i32_0 : i32, i32
  }
  func.func @transform_3(%arg0: i32, %arg1: i32) -> (i32, i32) {
    %c0_i32 = arith.constant 0 : i32
    %c0_i32_0 = arith.constant 0 : i32
    %c0_i32_1 = arith.constant 0 : i32
    return %c0_i32, %c0_i32_0 : i32, i32
  }
  func.func @transform_4(%arg0: i32, %arg1: i32) -> (i32, i32) {
    %c0_i32 = arith.constant 0 : i32
    %c0_i32_0 = arith.constant 0 : i32
    %c0_i32_1 = arith.constant 0 : i32
    return %c0_i32, %c0_i32_0 : i32, i32
  }
  func.func @transform_5(%arg0: i32, %arg1: i32) -> (i32, i32) {
    %c0_i32 = arith.constant 0 : i32
    %c0_i32_0 = arith.constant 0 : i32
    %c0_i32_1 = arith.constant 0 : i32
    return %c0_i32, %c0_i32_0 : i32, i32
  }
  func.func @transform_6(%arg0: i32, %arg1: i32) -> (i32, i32) {
    %c0_i32 = arith.constant 0 : i32
    %c0_i32_0 = arith.constant 0 : i32
    %c0_i32_1 = arith.constant 0 : i32
    return %c0_i32, %c0_i32_0 : i32, i32
  }
  func.func @transform_7(%arg0: i32, %arg1: i32) -> i32 {
    %c0_i32 = arith.constant 0 : i32
    %c0_i32_0 = arith.constant 0 : i32
    return %c0_i32 : i32
  }
  func.func @transform_8(%arg0: i32, %arg1: i32) -> (i32, i32, i32) {
    %c0_i32 = arith.constant 0 : i32
    %c0_i32_0 = arith.constant 0 : i32
    return %arg0, %arg1, %c0_i32 : i32, i32, i32
  }
}

</mosaic_0001>

<bundles_post_ra>
// kernel: tpu_custom_call.1
= control target key start
LH: loop header
LB: loop body
LE: loop exit
PB: predicated region body
PF: predicated region fallthrough
CT: control target
= control target key end

     0   :  { %s1968_s0 = inlined_call_operand.hbm [shape: bf16[2,8,32], index: 0, kind: input, shape index: {}]   ;;  %s1969_s1 = inlined_call_operand.hbm [shape: bf16[32,128], index: 1, kind: input, shape index: {}]   ;;  %s1970_s2 = inlined_call_operand.vmem [shape: f32[1,128], index: 2, kind: input, shape index: {}]   ;;  %s1971_s3 = inlined_call_operand.hbm [shape: bf16[32,128], index: 3, kind: input, shape index: {}]   ;;  %s1972_s4 = inlined_call_operand.vmem [shape: f32[1,128], index: 4, kind: input, shape index: {}]   ;;  %s1973_s5 = inlined_call_operand.hbm [shape: f32[128,128], index: 5, kind: input, shape index: {}]   ;;  %s1974_s6 = inlined_call_operand.hbm [shape: bf16[128,128], index: 6, kind: input, shape index: {}]   ;;  %s1975_s7 = inlined_call_operand.vmem [shape: f32[2], index: 7, kind: input, shape index: {}]   ;;  %s1976_s8 = inlined_call_operand.hbm [shape: f32[2,8,128], index: 8, kind: output, shape index: {}]  }
   0x1   :  { %1987 = sst [smem:[#allocation22_spill]] %s1969_s1 }
   0x2   :  { %1988 = sst [smem:[#allocation23_spill]] %s1971_s3 }
   0x3   :  { %1989 = sst [smem:[#allocation24_spill]] %s1976_s8 }
   0x4   :  { %13 = vsyncpa [#allocation6], 0 }
   0x5   :  { %15 = vsyncpa [#allocation6 + $0x1], 0 }
   0x6   :  { %16 = vsyncpa [#allocation10], 0 }
   0x7   :  { %17 = vsyncpa [#allocation13], 0 }
   0x8   :  { %18 = vsyncpa [#allocation8], 0 }
   0x9   :  { %19 = vsyncpa [#allocation7], 0 }
   0xa   :  { %21 = vsyncpa [#allocation7 + $0x1], 0  ;;  %s1601_s27 = smov 0   ;;  %s1603_s28 = smov 0  }
   0xb   :  { %s1605_s29 = smov 0   ;;  %s1607_s30 = smov 0  }
   0xc   :  { %s1609_s9 = smov 0   ;;  %s1611_s10 = smov 0  }
   0xd LB: > { %s1977_s11 = sadd.s32 4294967295, %s1539_s10   ;;  %p987_p0 = scmp.ge.s32.totalorder %s1539_s10, 1  ;;  %s1539_s10 = sphi %s1611_s10, %s27_s10   ;;  %s1535_s9 = sphi %s1609_s9, %s2015_s9   ;;  %s1531_s30 = sphi %s1607_s30, %s2014_s30   ;;  %s1527_s29 = sphi %s1605_s29, %s2013_s29   ;;  %s1523_s28 = sphi %s1603_s28, %s2012_s28   ;;  %s1519_s27 = sphi %s1601_s27, %s2011_s27  }
   0xe   : > { %p1635_p1 = scmp.eq.s32.totalorder %s1977_s11, 0  ;;  %p247_p2 = scmp.lt.s32.totalorder %s1539_s10, 3 }
   0xf   : > { %s1541_s14 = smov [#allocation9]   ;;  %s1542_s17 = smov [#allocation12]  }
  0x10   : > { %s1990_s12 = scalar_select %p1635_p1, 1, 0 }
  0x11   : > { %p1640_p3 = pnand %p987_p0, %p247_p2  ;;  %s259_s15 = sshll.u32 %s1541_s14, 4  ;;  %s1644_s15 = int_to_ptr.vmem [resolvable:$true] %s259_s15 }
  0x12   : > { %s291_s18 = sshll.u32 %s1542_s17, 4  ;;  %s1993_s1 = sld [smem:[#allocation22_spill]]  ;;  %s1655_s18 = int_to_ptr.vmem [resolvable:$true] %s291_s18 }
  0x13   : > { %s1991_s13 = scalar_select %p1640_p3, 1, 0 }
  0x14   : > { %p1179_p4 = pneg %p1640_p3 }
  0x16   : > { %p1651_p6 = pnand %p1179_p4, %p1635_p1 }
  0x18   : > { %s1288_s21 = scalar_lea.hbm %s1993_s1, 256  ;;  %p1665_p8 = pneg %p1651_p6 }
  0x19   : > { %p1289_p7 = scmp.ne.s32.totalorder %s1993_s1, %s1288_s21  ;;  %p1295_p11 = scmp.lt.u32.totalorder %s1288_s21, %s1993_s1 }
  0x1b   : > { %p1291_p9 = pnand %p1665_p8, %p1289_p7 }
  0x1d   : > { %p1292_p10 = pneg %p1291_p9 }
  0x1f   : > { %p1297_p12 = pnand %p1295_p11, %p1292_p10 }
  0x21   : > { %1300 = shalt.err (!%p1297_p12)
}
  0x22   : > { %s1301_s14 = scalar_lea.vmem %s1644_s15, 256  ;;  %p1309_p4 = scmp.lt.s32.totalorder %s1644_s15, %s1644_s15 }
  0x23   : > { %p1302_p13 = scmp.ne.s32.totalorder %s1644_s15, %s1301_s14  ;;  %p1310_p5 = scmp.lt.s32.totalorder %s1301_s14, %s1301_s14 }
  0x25   : > { %p1304_p0 = pnand %p1302_p13, %p1665_p8  ;;  %p1311_p7 = por %p1310_p5, %p1309_p4 }
  0x27   : > { %p1305_p2 = pneg %p1304_p0 }
  0x29   : > { %p1312_p9 = pnand %p1311_p7, %p1305_p2 }
  0x2b   : > { %1315 = shalt.err (!%p1312_p9)
}
  0x2c   : > { %s1979_s17 = smov 64   ;;  %s1981_s19 = smov 4  }
  0x2d   : > { %1182 = dma.hbm_to_vmem [thread:$0]  (!%p1651_p6), %s1993_s1, 256, %s1644_s15, [#allocation10], %s1979_s17, %s1979_s17, %s1981_s19  }
  0x2e   : > { %s1316_s25 = scalar_lea.hbm %s1973_s5, 2048 }
  0x2f   : > { %p1317_p5 = scmp.ne.s32.totalorder %s1973_s5, %s1316_s25  ;;  %p1323_p12 = scmp.lt.u32.totalorder %s1316_s25, %s1973_s5 }
  0x31   : > { %p1319_p10 = pnand %p1317_p5, %p1665_p8 }
  0x33   : > { %p1320_p11 = pneg %p1319_p10 }
  0x35   : > { %p1325_p13 = pnand %p1323_p12, %p1320_p11 }
  0x37   : > { %1328 = shalt.err (!%p1325_p13)
}
  0x38   : > { %s1329_s15 = scalar_lea.vmem %s1655_s18, 2048  ;;  %p1337_p7 = scmp.lt.s32.totalorder %s1655_s18, %s1655_s18 }
  0x39   : > { %p1330_p0 = scmp.ne.s32.totalorder %s1655_s18, %s1329_s15  ;;  %p1338_p9 = scmp.lt.s32.totalorder %s1329_s15, %s1329_s15 }
  0x3b   : > { %p1332_p2 = pnand %p1330_p0, %p1665_p8  ;;  %p1339_p5 = por %p1338_p9, %p1337_p7 }
  0x3d   : > { %p1333_p4 = pneg %p1332_p2 }
  0x3f   : > { %p1340_p10 = pnand %p1339_p5, %p1333_p4 }
  0x41   : > { %1343 = shalt.err (!%p1340_p10)
}
  0x42   : > { %s1545_s20 = smov 128   ;;  %s1546_s8 = smov 8  }
  0x43   : > { %1188 = dma.hbm_to_vmem [thread:$0]  (!%p1651_p6), %s1973_s5, 2048, %s1655_s18, [#allocation13], %s1545_s20, %s1545_s20, %s1546_s8  }
  0x44   : > { %s1547_s22 = smov [#allocation11]   ;;  %s1548_s25 = smov [#allocation14]  }
  0x45   : > { %s275_s23 = sshll.u32 %s1547_s22, 4  ;;  %s304_s26 = sshll.u32 %s1548_s25, 4  ;;  %s276_s23 = int_to_ptr.vmem [resolvable:$true] %s275_s23  ;;  %s1712_s26 = int_to_ptr.vmem [resolvable:$true] %s304_s26 }
  0x46   : > { %s1995_s3 = sld [smem:[#allocation23_spill]] }
  0x4c   : > { %s1344_s17 = scalar_lea.hbm %s1995_s3, 256 }
  0x4d   : > { %p1345_p11 = scmp.ne.s32.totalorder %s1995_s3, %s1344_s17  ;;  %p1351_p0 = scmp.lt.u32.totalorder %s1344_s17, %s1995_s3 }
  0x4f   : > { %p1347_p12 = pnand %p1345_p11, %p1665_p8 }
  0x51   : > { %p1348_p13 = pneg %p1347_p12 }
  0x53   : > { %p1353_p2 = pnand %p1351_p0, %p1348_p13 }
  0x55   : > { %1356 = shalt.err (!%p1353_p2)
}
  0x56   : > { %s1357_s20 = scalar_lea.vmem %s276_s23, 256  ;;  %p1365_p5 = scmp.lt.s32.totalorder %s276_s23, %s276_s23 }
  0x57   : > { %p1358_p4 = scmp.ne.s32.totalorder %s276_s23, %s1357_s20  ;;  %p1366_p10 = scmp.lt.s32.totalorder %s1357_s20, %s1357_s20 }
  0x59   : > { %p1360_p7 = pnand %p1358_p4, %p1665_p8  ;;  %p1367_p3 = por %p1366_p10, %p1365_p5 }
  0x5b   : > { %p1361_p9 = pneg %p1360_p7 }
  0x5d   : > { %p1368_p1 = pnand %p1367_p3, %p1361_p9 }
  0x5f   : > { %1371 = shalt.err (!%p1368_p1)
}
  0x60   : > { %s1996_s1 = smov 4   ;;  %s1997_s19 = smov 64  }
  0x61   : > { %1185 = dma.hbm_to_vmem [thread:$0]  (!%p1651_p6), %s1995_s3, 256, %s276_s23, [#allocation10], %s1997_s19, %s1997_s19, %s1996_s1  }
  0x62   : > { %s1372_s25 = scalar_lea.hbm %s1974_s6, 1024 }
  0x63   : > { %p1373_p11 = scmp.ne.s32.totalorder %s1974_s6, %s1372_s25  ;;  %p1379_p12 = scmp.lt.u32.totalorder %s1372_s25, %s1974_s6 }
  0x65   : > { %p1375_p1 = pnand %p1373_p11, %p1665_p8 }
  0x67   : > { %p1376_p3 = pneg %p1375_p1 }
  0x69   : > { %p1381_p13 = pnand %p1379_p12, %p1376_p3 }
  0x6b   : > { %1384 = shalt.err (!%p1381_p13)
}
  0x6c   : > { %s1385_s23 = scalar_lea.vmem %s1712_s26, 1024  ;;  %p1393_p7 = scmp.lt.s32.totalorder %s1712_s26, %s1712_s26 }
  0x6d   : > { %p1386_p0 = scmp.ne.s32.totalorder %s1712_s26, %s1385_s23  ;;  %p1394_p9 = scmp.lt.s32.totalorder %s1385_s23, %s1385_s23 }
  0x6f   : > { %p1388_p2 = pnand %p1386_p0, %p1665_p8  ;;  %p1395_p5 = por %p1394_p9, %p1393_p7 }
  0x71   : > { %p1389_p4 = pneg %p1388_p2 }
  0x73   : > { %p1396_p10 = pnand %p1395_p5, %p1389_p4 }
  0x75   : > { %1399 = shalt.err (!%p1396_p10)
}
  0x76   : > { %1191 = dma.hbm_to_vmem [thread:$0]  (!%p1651_p6), %s1974_s6, 1024, %s1712_s26, [#allocation13], %s1997_s19, %s1997_s19, %s1996_s1  }
  0x77   : > { %s318_s22 = sshll.u32 %s1975_s7, 4  ;;  %s319_s22 = int_to_ptr.vmem [resolvable:$true] %s318_s22 }
  0x78   : > { %s1400_s25 = scalar_lea.vmem %s319_s22, 16  ;;  %p1408_p12 = scmp.lt.s32.totalorder %s319_s22, %s319_s22 }
  0x79   : > { %p1401_p11 = scmp.ne.s32.totalorder %s319_s22, %s1400_s25  ;;  %p1409_p13 = scmp.lt.s32.totalorder %s1400_s25, %s1400_s25 }
  0x7b   : > { %p1403_p1 = pnand %p1401_p11, %p1665_p8  ;;  %p1410_p0 = por %p1409_p13, %p1408_p12 }
  0x7d   : > { %p1404_p3 = pneg %p1403_p1 }
  0x7f   : > { %p1411_p2 = pnand %p1410_p0, %p1404_p3 }
  0x81   : > { %1414 = shalt.err (!%p1411_p2)
}
  0x82   : > { %s1549_s14 = smov [#allocation15]   ;;  %s986_s24 = sadd.s32 4294967294, %s1539_s10  }
  0x83   : > { %1194 = dma.vmem_to_smem (!%p1651_p6), %s319_s22, 16, %s1549_s14, [#allocation8]  }
  0x84   : > { %s39_s26 = sadd.s32 1, %s1535_s9  ;;  %s48_s1 = sadd.s32 1, %s1527_s29 }
  0x85   : > { %p41_p8 = scmp.ge.s32.totalorder %s39_s26, 2  ;;  %p55_p4 = scmp.ne.s32.totalorder %s1527_s29, %s1523_s28 }
  0x86   : > { %p56_p7 = scmp.eq.s32.totalorder %s1539_s10, 0  ;;  %p61_p9 = scmp.ne.s32.totalorder %s1523_s28, %s1519_s27 }
  0x87   : > { %s2017_s26 = smov (%p41_p8, %s39_s26), 0  ;;  %p1999_p10 = scmp.ne.s32.totalorder %s1990_s12, 0 }
  0x88   : > { %p1778_p5 = por %p56_p7, %p55_p4  ;;  %s43_s15 = ssub.s32 %s1535_s9, %s2017_s26 }
  0x89   : > { %p1784_p6 = por %p1999_p10, %p61_p9  ;;  %s2001_s11 = sadd.s32 4294967295, %s1539_s10  }
  0x8a   : > { %p234_p11 = scmp.eq.s32.totalorder %s2001_s11, 1  ;;  %p46_p1 = scmp.eq.s32.totalorder %s43_s15, 0 }
  0x8b   : > { %p240_p3 = scmp.eq.s32.totalorder %s986_s24, 1  ;;  %p1208_p13 = scmp.lt.s32.totalorder %s1539_s10, 2 }
  0x8c   : > { %p1792_p12 = por %p234_p11, %p55_p4  ;;  %s329_s8 = sand.u32 1, %s1527_s29  }
  0x8d   : > { %s1798_s23 = scalar_select %p46_p1, %s1527_s29, %s48_s1  }
  0x8e   : > { %s2002_s18 = scalar_select %p1792_p12, 1, 0 }
  0x8f   : > { %p1800_p0 = por %p240_p3, %p61_p9  ;;  %s994_s17 = sshll.u32 %s329_s8, 2 }
  0x90   : > { %s995_s21 = sshll.u32 %s1535_s9, 6  ;;  %s333_s24 = scalar_lea.vmem [#allocation5], %s994_s17 }
  0x91   : > { %s2003_s20 = scalar_select %p1800_p0, 1, 0 }
  0x92   : > { %s1809_s14 = scalar_lea.hbm %s1968_s0, %s995_s21  ;;  %s341_s15 = sshll.u32 %s333_s24, 4  ;;  %s1811_s15 = int_to_ptr.vmem [resolvable:$true] %s341_s15 }
  0x93   : > { %p1815_p2 = pnand %p1208_p13, %p1778_p5  ;;  %s330_s11 = scalar_lea.sflag [#allocation6], %s329_s8 }
  0x94   : > { %s1415_s3 = scalar_lea.hbm %s1809_s14, 64  ;;  %s1420_s22 = scalar_lea.hbm %s1968_s0, 128 }
  0x95   : > { %p1416_p8 = scmp.ne.s32.totalorder %s1809_s14, %s1415_s3  ;;  %p1417_p4 = pneg %p1815_p2 }
  0x96   : > { %p1421_p5 = scmp.lt.u32.totalorder %s1809_s14, %s1968_s0  ;;  %p1422_p10 = scmp.lt.u32.totalorder %s1420_s22, %s1415_s3 }
  0x97   : > { %p1418_p7 = pnand %p1417_p4, %p1416_p8  ;;  %p1424_p1 = scmp.lt.u32.totalorder %s1415_s3, %s1809_s14 }
  0x98   : > { %p1423_p11 = por %p1422_p10, %p1421_p5 }
  0x99   : > { %p1419_p9 = pneg %p1418_p7 }
  0x9a   : > { %p1425_p3 = por %p1424_p1, %p1423_p11 }
  0x9c   : > { %p1426_p13 = pnand %p1425_p3, %p1419_p9 }
  0x9e   : > { %1429 = shalt.err (!%p1426_p13)
}
  0x9f   : > { %s1430_s8 = scalar_lea.vmem %s1811_s15, 64  ;;  %s1550_s24 = smov [#allocation5]  }
  0xa0   : > { %p1431_p8 = scmp.ne.s32.totalorder %s1811_s15, %s1430_s8  ;;  %s1435_s17 = sshll.u32 %s1550_s24, 4  ;;  %s1436_s17 = int_to_ptr.vmem [resolvable:$false] %s1435_s17 }
  0xa1   : > { %s1437_s21 = scalar_lea.vmem %s1436_s17, 128  ;;  %p1438_p12 = scmp.lt.s32.totalorder %s1811_s15, %s1436_s17 }
  0xa2   : > { %p1433_p7 = pnand %p1431_p8, %p1417_p4  ;;  %p1439_p5 = scmp.lt.s32.totalorder %s1437_s21, %s1430_s8 }
  0xa4   : > { %p1434_p0 = pneg %p1433_p7  ;;  %p1440_p10 = por %p1439_p5, %p1438_p12 }
  0xa6   : > { %p1441_p11 = pnand %p1440_p10, %p1434_p0 }
  0xa8   : > { %1444 = shalt.err (!%p1441_p11)
}
  0xa9   : > { %1198 = dma.hbm_to_vmem [thread:$0]  (!%p1815_p2), %s1809_s14, 64, %s1811_s15, %s330_s11  }
  0xaa   : > { %p2005_p9 = scmp.ne.s32.totalorder %s1991_s13, 0 }
  0xab   : > { %s1847_s3 = sand.u32 (!%p2005_p9), 1, %s1523_s28  }
  0xac   : > { %350 = sbr.rel (%p2005_p9) target bundleno = 879 (0x36f), region = 52  ;;  %s997_s22 = sshll.u32 (!%p2005_p9), %s1847_s3, 2 }
  0xad   : > { %s353_s16 = scalar_lea.sflag (!%p2005_p9), [#allocation6], %s1847_s3  ;;  %s356_s25 = scalar_lea.vmem (!%p2005_p9), [#allocation5], %s997_s22 }
  0xb3   : > { %1498 = dma.done.wait (%p1784_p6), %s353_s16, 64  }
  0xb4   : > { %1500 = vsyncadd (%p1784_p6), %s353_s16, 4294967232  ;;  %p2006_p12 = scmp.ne.s32.totalorder %s1990_s12, 0 }
  0xb6   : > { %1502 = dma.done.wait (%p2006_p12), [#allocation10], 512  }
  0xb7   : > { %1504 = vsyncadd (%p2006_p12), [#allocation10], 4294966784 }
  0xb8   : > { %1506 = dma.done.wait (%p2006_p12), [#allocation13], 3072  }
  0xb9   : > { %1508 = vsyncadd (%p2006_p12), [#allocation13], 4294964224 }
  0xba   : > { %1510 = dma.done.wait (%p2006_p12), [#allocation8], 16  }
  0xbb   : > { %1512 = vsyncadd (%p2006_p12), [#allocation8], 4294967280 }
  0xbc   : > { %381 = sfence }
  0xbd   : > { %v1276_v0 = vld [vmem:[#allocation9] sm:$0xff]   ;;  %v1551_v1 = vmov 0.0   ;;  %v1277_v2 = vld [vmem:[#allocation9 + $0x8] sm:$0xff]   ;;  %vm1552_vm0 = vmmov 0   ;;  %v411_v5 = vld [vmem:[%s356_s25] sm:$0xf] }
  0xbe   : > { %1060 = vmatprep.subr.bf16.mxu0 %v1551_v1  ;;  %1068 = vmatprep.subr.bf16.mxu1 %v1551_v1  ;;  %v544_v3 = vld [vmem:[#allocation12] sm:$0xff]  ;;  %v545_v4 = vld [vmem:[#allocation12 + $0x8] sm:$0xff]  ;;  %vm435_vm1 = vcmask 261120   ;;  %v546_v7 = vld [vmem:[#allocation12 + $0x10] sm:$0xff]  ;;  %v1553_v8 = vmov 0.0|0.0   ;;  %vm811_vm5 = vcmask 1040384  }
  0xbf   : > { %1061 = vmatpush3.bf16.msra.mxu0 %v1276_v0  ;;  %1064 = vmatprep.mubr.msk.bf16.mxu0 %vm1552_vm0, %v1551_v1  ;;  %v1132_v6 = vpack.c.bf16 %v545_v4, %v544_v3  ;;  %v547_v9 = vld [vmem:[#allocation12 + $0x18] sm:$0xff]  ;;  %v548_v10 = vld [vmem:[#allocation12 + $0x20] sm:$0xff]  ;;  %v549_v11 = vld [vmem:[#allocation12 + $0x28] sm:$0xff]  ;;  %v1554_v52 = vmov 1.0|1.0   ;;  %vm813_vm6 = vcmask 1041408  }
  0xc0   : > { %1062 = vmatprep.subr.bf16.mxu0 %v1551_v1  ;;  %1072 = vmatprep.mubr.msk.bf16.mxu1 %vm1552_vm0, %v1551_v1  ;;  %v1135_v12 = vpack.c.bf16 %v547_v9, %v546_v7  ;;  %v1138_v13 = vpack.c.bf16 %v549_v11, %v548_v10  ;;  %v550_v14 = vld [vmem:[#allocation12 + $0x30] sm:$0xff]  ;;  %v551_v15 = vld [vmem:[#allocation12 + $0x38] sm:$0xff]  ;;  %v552_v17 = vld [vmem:[#allocation12 + $0x40] sm:$0xff]  ;;  %vm815_vm7 = vcmask 1042432   ;;  %vm817_vm8 = vcmask 1043456   ;;  %s1900_s15 = sld [smem:[#allocation15]] }
  0xc1   : > { %v1141_v16 = vpack.c.bf16 %v551_v15, %v550_v14  ;;  %v553_v18 = vld [vmem:[#allocation12 + $0x48] sm:$0xff]  ;;  %v554_v20 = vld [vmem:[#allocation12 + $0x50] sm:$0xff]  ;;  %v555_v21 = vld [vmem:[#allocation12 + $0x58] sm:$0xff]  ;;  %s1902_s1 = sld [smem:[#allocation15 + $0x1]]  ;;  %vm819_vm9 = vcmask 1044480   ;;  %vm821_vm10 = vcmask 1045504  }
  0xc2   : > { %v1144_v19 = vpack.c.bf16 %v553_v18, %v552_v17  ;;  %v1147_v22 = vpack.c.bf16 %v555_v21, %v554_v20  ;;  %v556_v23 = vld [vmem:[#allocation12 + $0x60] sm:$0xff]  ;;  %v557_v24 = vld [vmem:[#allocation12 + $0x68] sm:$0xff]  ;;  %v558_v26 = vld [vmem:[#allocation12 + $0x70] sm:$0xff]  ;;  %s1003_s11 = sshll.u32 %s1847_s3, 3  ;;  %vm823_vm11 = vcmask 1046528   ;;  %s1023_s8 = sshll.u32 %s1531_s30, 7 }
  0xc3   : > { %1063 = vmatpush3.bf16.msra.mxu0 %v1277_v2  ;;  %v1150_v25 = vpack.c.bf16 %v557_v24, %v556_v23  ;;  %v559_v27 = vld [vmem:[#allocation12 + $0x78] sm:$0xff]  ;;  %v1278_v29 = vld [vmem:[#allocation11] sm:$0xff]   ;;  %v1280_v31 = vld [vmem:[#allocation14] sm:$0xff]   ;;  %s409_s24 = scalar_lea.vmem [#allocation16], %s1003_s11  ;;  %s2007_s16 = sld [smem:[#allocation24_spill]] }
  0xc4   : > { %1131 = vmatprep.subr.bf16.mxu0 %v1553_v8  ;;  %v1153_v28 = vpack.c.bf16 %v559_v27, %v558_v26  ;;  %1069 = vmatpush3.bf16.msra.mxu1 %v1278_v29  ;;  %v1279_v30 = vld [vmem:[#allocation11 + $0x8] sm:$0xff]   ;;  %v1281_v32 = vld [vmem:[#allocation14 + $0x8] sm:$0xff]   ;;  %v1282_v33 = vld [vmem:[#allocation14 + $0x10] sm:$0xff]   ;;  %s855_s17 = sshll.u32 %s409_s24, 4  ;;  %s841_s12 = scalar_lea.sflag [#allocation7], %s1847_s3  ;;  %s1921_s17 = int_to_ptr.vmem [resolvable:$true] %s855_s17 }
  0xc5   : > { %1070 = vmatprep.subr.bf16.mxu1 %v1551_v1  ;;  %v1283_v34 = vld [vmem:[#allocation14 + $0x18] sm:$0xff]   ;;  %v1284_v35 = vld [vmem:[#allocation14 + $0x20] sm:$0xff]   ;;  %v1285_v36 = vld [vmem:[#allocation14 + $0x28] sm:$0xff]   ;;  %s1445_s13 = scalar_lea.vmem %s1921_s17, 128  ;;  %p2008_p0 = scmp.ne.s32.totalorder %s2002_s18, 0 }
  0xc6   : > { %1065 = vmatmul.mubr.msk.bf16.vlgmr.msra.gmra.mrb[0].mxu0 %vm435_vm1, %v411_v5  ;;  %v1286_v37 = vld [vmem:[#allocation14 + $0x30] sm:$0xff]   ;;  %v1004_v38 = vld [vmem:[%s1970_s2] ss:$0 sm:$0xff]  ;;  %p1446_p6 = scmp.ne.s32.totalorder %s1921_s17, %s1445_s13  ;;  %s1555_s30 = smov [#allocation16]  }
  0xc7   : > { %1133 = vmatpush3.bf16.msra.mxu0 %v1132_v6  ;;  %1108 = vmatprep.mubr.msk.f32.mxu0 %vm1552_vm0, %v1551_v1  ;;  %v1287_v45 = vld [vmem:[#allocation14 + $0x38] sm:$0xff]   ;;  %s1449_s19 = sshll.u32 %s1555_s30, 4  ;;  %s1450_s19 = int_to_ptr.vmem [resolvable:$false] %s1449_s19 }
  0xc8   : > { %1134 = vmatprep.subr.bf16.mxu0 %v1553_v8  ;;  %1071 = vmatpush3.bf16.msra.mxu1 %v1279_v30  ;;  %v1008_v53 = vld [vmem:[%s1972_s4] ss:$0 sm:$0xff]  ;;  %p1447_p2 = pnand %p1446_p6, %p2008_p0  ;;  %s1451_s14 = scalar_lea.vmem %s1450_s19, 256 }
  0xc9   : > { %1111 = vmatprep.subr.bf16.mxu1 %v1551_v1  ;;  %s1919_s25 = scalar_lea.hbm %s2007_s16, %s1023_s8  ;;  %p1452_p1 = scmp.lt.s32.totalorder %s1921_s17, %s1450_s19 }
  0xca   : > { %p1448_p4 = pneg %p1447_p2  ;;  %p1453_p3 = scmp.lt.s32.totalorder %s1451_s14, %s1445_s13 }
  0xcb   : > { %1136 = vmatpush3.bf16.msra.mxu0 %v1135_v12  ;;  %1073 = vmatmul.mubr.msk.bf16.vlgmr.msra.gmra.mrb[0].mxu1 %vm435_vm1, %v411_v5 }
  0xcc   : > { %1137 = vmatprep.subr.bf16.mxu0 %v1553_v8  ;;  %1112 = vmatpush3.bf16.msra.mxu1 %v1280_v31  ;;  %p1454_p13 = por %p1453_p3, %p1452_p1 }
  0xcd   : > { %1127 = vmatprep.mubr.msk.bf16.mxu1 %vm1552_vm0, %v1551_v1  ;;  %1113 = vmatprep.subr.bf16.mxu1 %v1551_v1 }
  0xce   : > { %p1455_p8 = pnand %p1454_p13, %p1448_p4 }
  0xcf   : > { %1139 = vmatpush3.bf16.msra.mxu0 %v1138_v13 }
  0xd0   : > { %1140 = vmatprep.subr.bf16.mxu0 %v1553_v8  ;;  %1114 = vmatpush3.bf16.msra.mxu1 %v1281_v32  ;;  %v825_v32 = vstv %s1900_s15 }
  0xd1   : > { %1115 = vmatprep.subr.bf16.mxu1 %v1551_v1 }
  0xd3   : > { %1142 = vmatpush3.bf16.msra.mxu0 %v1141_v16 }
  0xd4   : > { %1143 = vmatprep.subr.bf16.mxu0 %v1553_v8  ;;  %1116 = vmatpush3.bf16.msra.mxu1 %v1282_v33  ;;  %v834_v33 = vstv %s1902_s1 }
  0xd5   : > { %1117 = vmatprep.subr.bf16.mxu1 %v1551_v1 }
  0xd7   : > { %1145 = vmatpush3.bf16.msra.mxu0 %v1144_v19 }
  0xd8   : > { %1146 = vmatprep.subr.bf16.mxu0 %v1553_v8  ;;  %1118 = vmatpush3.bf16.msra.mxu1 %v1283_v34 }
  0xd9   : > { %1119 = vmatprep.subr.bf16.mxu1 %v1551_v1 }
  0xdb   : > { %1148 = vmatpush3.bf16.msra.mxu0 %v1147_v22 }
  0xdc   : > { %1149 = vmatprep.subr.bf16.mxu0 %v1553_v8  ;;  %1120 = vmatpush3.bf16.msra.mxu1 %v1284_v35 }
  0xdd   : > { %1121 = vmatprep.subr.bf16.mxu1 %v1551_v1 }
  0xdf   : > { %1151 = vmatpush3.bf16.msra.mxu0 %v1150_v25 }
  0xe0   : > { %1152 = vmatprep.subr.bf16.mxu0 %v1553_v8  ;;  %1122 = vmatpush3.bf16.msra.mxu1 %v1285_v36 }
  0xe1   : > { %1123 = vmatprep.subr.bf16.mxu1 %v1551_v1 }
  0xe3   : > { %1154 = vmatpush3.bf16.msra.mxu0 %v1153_v28 }
  0xe4   : > { %1124 = vmatpush3.bf16.msra.mxu1 %v1286_v37 }
  0xe5   : > { %1125 = vmatprep.subr.bf16.mxu1 %v1551_v1 }
  0xe8   : > { %1126 = vmatpush3.bf16.msra.mxu1 %v1287_v45 }
 0x199   : > { %v473_v39 = vpop.f32.mrb[0].mxu0 }
 0x19a   : > { %v474_v40 = vadd.f32 %v1004_v38, %v473_v39  ;;  %v1066_v41 = vpop.f32.mrb[1].mxu0 }
 0x19b   : > { %v476_v42 = vpop.f32.mrb[2].mxu0 }
 0x19c   : > { %v479_v43 = vmax.f32 %v474_v40, 0.0  ;;  %v1067_v44 = vpop.f32.mrb[3].mxu0 }
 0x19e   : > { %1109 = vmatmul.mubr.f32.vlgmr.msra.gmra.mrb[4].mxu0 %v479_v43  ;;  %v537_v46 = vpop.f32.mrb[0].mxu1 }
 0x19f   : > { %v1074_v47 = vpop.f32.mrb[1].mxu1  ;;  %v538_v54 = vadd.f32 %v1008_v53, %v537_v46 }
 0x1a0   : > { %v540_v48 = vpop.f32.mrb[2].mxu1 }
 0x1a1   : > { %v1075_v49 = vpop.f32.mrb[3].mxu1  ;;  %v543_v55 = vmax.f32 %v538_v54, 0.0 }
 0x1a3   : > { %v756_v57 = vrot.slane %v543_v55, 7 }
 0x1a5   : > { %v767_v63 = vrot.slane %v756_v57, 7  ;;  %v827_v3 = vsel %vm811_vm5, %v543_v55, %v756_v57 }
 0x271   : > { %v626_v50 = vpop.f32.mrb[4].mxu0 }
 0x272   : > { %vm630_vm2 = vcmp.gt.f32.partialorder %v626_v50, 0.5  ;;  %v1110_v51 = vpop.f32.mrb[5].mxu0 }
 0x273   : > { %vm1026_vm3 = vmpackc.low %vm630_vm2, %vm630_vm2 }
 0x274   : > { %1128 = vmatmul.mubr.msk.bf16.vlgmr.msra.gmra.mrb[4].mxu1 %vm1026_vm3, %v1554_v52 }
 0x347   : > { %v746_v56 = vpop.f32.mrb[4].mxu1 }
 0x348   : > { %vm752_vm4 = vcmp.gt.f32.partialorder %v746_v56, 0.5  ;;  %v1129_v58 = vpop.f32.mrb[5].mxu1 }
 0x349   : > { %v749_v59 = vpop.f32.mrb[6].mxu1  ;;  %v762_v60 = vsel %vm752_vm4, %v543_v55, %v756_v57 }
 0x34a   : > { %v1130_v61 = vpop.f32.mrb[7].mxu1  ;;  %v764_v62 = vrot.slane %v762_v60, 7  ;;  %v812_v0 = vsel %vm811_vm5, %v543_v55, %v762_v60 }
 0x34c   : > { %v769_v1 = vsel %vm752_vm4, %v764_v62, %v767_v63  ;;  %v770_v2 = vsel %vm752_vm4, %v543_v55, %v764_v62 }
 0x34d   : > { %v772_v4 = vrot.slane %v770_v2, 7  ;;  %v775_v5 = vrot.slane %v769_v1, 7  ;;  %v814_v6 = vsel %vm813_vm6, %v812_v0, %v770_v2  ;;  %v828_v7 = vsel %vm813_vm6, %v827_v3, %v769_v1 }
 0x34f   : > { %v777_v8 = vsel %vm752_vm4, %v772_v4, %v775_v5  ;;  %v778_v9 = vsel %vm752_vm4, %v543_v55, %v772_v4 }
 0x350   : > { %v780_v10 = vrot.slane %v778_v9, 7  ;;  %v783_v11 = vrot.slane %v777_v8, 7  ;;  %v816_v12 = vsel %vm815_vm7, %v814_v6, %v778_v9  ;;  %v829_v13 = vsel %vm815_vm7, %v828_v7, %v777_v8 }
 0x352   : > { %v785_v14 = vsel %vm752_vm4, %v780_v10, %v783_v11  ;;  %v786_v15 = vsel %vm752_vm4, %v543_v55, %v780_v10 }
 0x353   : > { %v788_v16 = vrot.slane %v786_v15, 7  ;;  %v791_v17 = vrot.slane %v785_v14, 7  ;;  %v818_v18 = vsel %vm817_vm8, %v816_v12, %v786_v15  ;;  %v830_v19 = vsel %vm817_vm8, %v829_v13, %v785_v14 }
 0x355   : > { %v793_v20 = vsel %vm752_vm4, %v788_v16, %v791_v17  ;;  %v794_v21 = vsel %vm752_vm4, %v543_v55, %v788_v16 }
 0x356   : > { %v796_v22 = vrot.slane %v794_v21, 7  ;;  %v799_v23 = vrot.slane %v793_v20, 7  ;;  %v820_v24 = vsel %vm819_vm9, %v818_v18, %v794_v21  ;;  %v831_v25 = vsel %vm819_vm9, %v830_v19, %v793_v20 }
 0x358   : > { %v801_v26 = vsel %vm752_vm4, %v796_v22, %v799_v23  ;;  %v802_v27 = vsel %vm752_vm4, %v543_v55, %v796_v22 }
 0x359   : > { %v804_v28 = vrot.slane %v802_v27, 7  ;;  %v807_v29 = vrot.slane %v801_v26, 7  ;;  %v822_v30 = vsel %vm821_vm10, %v820_v24, %v802_v27  ;;  %v832_v31 = vsel %vm821_vm10, %v831_v25, %v801_v26 }
 0x35b   : > { %v809_v34 = vsel %vm752_vm4, %v804_v28, %v807_v29  ;;  %v810_v35 = vsel %vm752_vm4, %v543_v55, %v804_v28 }
 0x35c   : > { %v824_v36 = vsel %vm823_vm11, %v822_v30, %v810_v35  ;;  %v833_v37 = vsel %vm823_vm11, %v832_v31, %v809_v34 }
 0x35d   : > { %v826_v38 = vmul.f32 %v825_v32, %v824_v36  ;;  %v835_v39 = vmul.f32 %v834_v33, %v833_v37 }
 0x35f   : > { %v836_v40 = vadd.f32 %v835_v39, %v826_v38 }
 0x361   : > { %837 = vst [vmem:[%s409_s24] sm:$0xff] %v836_v40 }
 0x362   : > { %1458 = shalt.err (!%p1455_p8)
}
 0x363   : > { %s1459_s3 = scalar_lea.hbm %s1919_s25, 128  ;;  %s1463_s11 = scalar_lea.hbm %s2007_s16, 256 }
 0x364   : > { %p1460_p7 = scmp.ne.s32.totalorder %s1919_s25, %s1459_s3  ;;  %p1464_p11 = scmp.lt.u32.totalorder %s1919_s25, %s2007_s16 }
 0x365   : > { %p1465_p9 = scmp.lt.u32.totalorder %s1463_s11, %s1459_s3  ;;  %p1467_p6 = scmp.lt.u32.totalorder %s1459_s3, %s1919_s25 }
 0x366   : > { %p1461_p5 = pnand %p1460_p7, %p2008_p0 }
 0x367   : > { %p1466_p12 = por %p1465_p9, %p1464_p11 }
 0x368   : > { %p1462_p10 = pneg %p1461_p5 }
 0x369   : > { %p1468_p2 = por %p1467_p6, %p1466_p12 }
 0x36b   : > { %p1469_p4 = pnand %p1468_p2, %p1462_p10 }
 0x36d   : > { %1472 = shalt.err (!%p1469_p4)
}
 0x36e   : > { %1177 = dma.vmem_to_hbm [thread:$0]  (%p2008_p0), %s1921_s17, 128, %s1919_s25, %s841_s12  }
 0x36f PF: > { %s867_s21 = sand.u32 1, %s1519_s27   ;;  %p2009_p1 = scmp.ne.s32.totalorder %s2003_s20, 0 }
 0x370   : > { %p2010_p3 = scmp.ge.s32.totalorder %s1539_s10, 2  ;;  %s868_s22 = scalar_lea.sflag [#allocation7], %s867_s21 }
 0x372   : > { %p1200_p13 = pnand %p2010_p3, %p2009_p1 }
 0x374   : > { %1514 = dma.done.wait (!%p1200_p13), %s868_s22, 128  }
 0x375   : > { %1516 = vsyncadd (!%p1200_p13), %s868_s22, 4294967168  ;;  %s27_s10 = sadd.s32 1, %s1539_s10   ;;  %s2011_s27 = smov %s1523_s28 }
 0x376   : > { %p24_p8 = scmp.ge.s32.totalorder %s27_s10, 4   ;;  %s2012_s28 = smov %s1527_s29 }
 0x377   : > { %s2013_s29 = smov %s1798_s23  ;;  %s2014_s30 = smov %s1535_s9 }
 0x378   : > { %s2015_s9 = smov %s2017_s26  ;;  %26 = sbr.rel (!%p24_p8) target bundleno = 13 (0xd), region = 118 }
 0x37f   :  { %873 = vsyncpa [#allocation6], 1 }
 0x380   :  { %875 = vsyncpa [#allocation6 + $0x1], 1 }
 0x381   :  { %876 = vsyncpa [#allocation10], 1 }
 0x382   :  { %877 = vsyncpa [#allocation13], 1 }
 0x383   :  { %878 = vsyncpa [#allocation7], 1 }
 0x384   :  { %880 = vsyncpa [#allocation7 + $0x1], 1 }
 0x385   :  { %881 = vsyncpa [#allocation8], 1 }
 0x386   :  { %883 = vsyncpa [#allocation8 + $0x1], 1 }

// kernel: tpu_custom_call.1
= control target key start
LH: loop header
LB: loop body
LE: loop exit
PB: predicated region body
PF: predicated region fallthrough
CT: control target
= control target key end

     0   :  { %s1968_s0 = inlined_call_operand.hbm [shape: bf16[2,8,32], index: 0, kind: input, shape index: {}]   ;;  %s1969_s1 = inlined_call_operand.hbm [shape: bf16[32,128], index: 1, kind: input, shape index: {}]   ;;  %s1970_s2 = inlined_call_operand.vmem [shape: f32[1,128], index: 2, kind: input, shape index: {}]   ;;  %s1971_s3 = inlined_call_operand.hbm [shape: bf16[32,128], index: 3, kind: input, shape index: {}]   ;;  %s1972_s4 = inlined_call_operand.vmem [shape: f32[1,128], index: 4, kind: input, shape index: {}]   ;;  %s1973_s5 = inlined_call_operand.hbm [shape: f32[128,128], index: 5, kind: input, shape index: {}]   ;;  %s1974_s6 = inlined_call_operand.hbm [shape: bf16[128,128], index: 6, kind: input, shape index: {}]   ;;  %s1975_s7 = inlined_call_operand.vmem [shape: f32[2], index: 7, kind: input, shape index: {}]   ;;  %s1976_s8 = inlined_call_operand.hbm [shape: f32[2,8,128], index: 8, kind: output, shape index: {}]  }
   0x1   :  { %1987 = sst [smem:[#allocation22_spill]] %s1969_s1 }
   0x2   :  { %1988 = sst [smem:[#allocation23_spill]] %s1971_s3 }
   0x3   :  { %1989 = sst [smem:[#allocation24_spill]] %s1976_s8 }
   0x4   :  { %13 = vsyncpa [#allocation6], 0 }
   0x5   :  { %15 = vsyncpa [#allocation6 + $0x1], 0 }
   0x6   :  { %16 = vsyncpa [#allocation10], 0 }
   0x7   :  { %17 = vsyncpa [#allocation13], 0 }
   0x8   :  { %18 = vsyncpa [#allocation8], 0 }
   0x9   :  { %19 = vsyncpa [#allocation7], 0 }
   0xa   :  { %21 = vsyncpa [#allocation7 + $0x1], 0  ;;  %s1601_s27 = smov 0   ;;  %s1603_s28 = smov 0  }
   0xb   :  { %s1605_s29 = smov 0   ;;  %s1607_s30 = smov 0  }
   0xc   :  { %s1609_s9 = smov 0   ;;  %s1611_s10 = smov 0  }
   0xd LB: > { %s1977_s11 = sadd.s32 4294967295, %s1539_s10   ;;  %p987_p0 = scmp.ge.s32.totalorder %s1539_s10, 1  ;;  %s1539_s10 = sphi %s1611_s10, %s27_s10   ;;  %s1535_s9 = sphi %s1609_s9, %s2015_s9   ;;  %s1531_s30 = sphi %s1607_s30, %s2014_s30   ;;  %s1527_s29 = sphi %s1605_s29, %s2013_s29   ;;  %s1523_s28 = sphi %s1603_s28, %s2012_s28   ;;  %s1519_s27 = sphi %s1601_s27, %s2011_s27  }
   0xe   : > { %p1635_p1 = scmp.eq.s32.totalorder %s1977_s11, 0  ;;  %p247_p2 = scmp.lt.s32.totalorder %s1539_s10, 3 }
   0xf   : > { %s1541_s14 = smov [#allocation9]   ;;  %s1542_s17 = smov [#allocation12]  }
  0x10   : > { %s1990_s12 = scalar_select %p1635_p1, 1, 0 }
  0x11   : > { %p1640_p3 = pnand %p987_p0, %p247_p2  ;;  %s259_s15 = sshll.u32 %s1541_s14, 4  ;;  %s1644_s15 = int_to_ptr.vmem [resolvable:$true] %s259_s15 }
  0x12   : > { %s291_s18 = sshll.u32 %s1542_s17, 4  ;;  %s1993_s1 = sld [smem:[#allocation22_spill]]  ;;  %s1655_s18 = int_to_ptr.vmem [resolvable:$true] %s291_s18 }
  0x13   : > { %s1991_s13 = scalar_select %p1640_p3, 1, 0 }
  0x14   : > { %p1179_p4 = pneg %p1640_p3 }
  0x16   : > { %p1651_p6 = pnand %p1179_p4, %p1635_p1 }
  0x18   : > { %s1288_s21 = scalar_lea.hbm %s1993_s1, 256  ;;  %p1665_p8 = pneg %p1651_p6 }
  0x19   : > { %p1289_p7 = scmp.ne.s32.totalorder %s1993_s1, %s1288_s21  ;;  %p1295_p11 = scmp.lt.u32.totalorder %s1288_s21, %s1993_s1 }
  0x1b   : > { %p1291_p9 = pnand %p1665_p8, %p1289_p7 }
  0x1d   : > { %p1292_p10 = pneg %p1291_p9 }
  0x1f   : > { %p1297_p12 = pnand %p1295_p11, %p1292_p10 }
  0x21   : > { %1300 = shalt.err (!%p1297_p12)
}
  0x22   : > { %s1301_s14 = scalar_lea.vmem %s1644_s15, 256  ;;  %p1309_p4 = scmp.lt.s32.totalorder %s1644_s15, %s1644_s15 }
  0x23   : > { %p1302_p13 = scmp.ne.s32.totalorder %s1644_s15, %s1301_s14  ;;  %p1310_p5 = scmp.lt.s32.totalorder %s1301_s14, %s1301_s14 }
  0x25   : > { %p1304_p0 = pnand %p1302_p13, %p1665_p8  ;;  %p1311_p7 = por %p1310_p5, %p1309_p4 }
  0x27   : > { %p1305_p2 = pneg %p1304_p0 }
  0x29   : > { %p1312_p9 = pnand %p1311_p7, %p1305_p2 }
  0x2b   : > { %1315 = shalt.err (!%p1312_p9)
}
  0x2c   : > { %s1979_s17 = smov 64   ;;  %s1981_s19 = smov 4  }
  0x2d   : > { %1182 = dma.hbm_to_vmem [thread:$0]  (!%p1651_p6), %s1993_s1, 256, %s1644_s15, [#allocation10], %s1979_s17, %s1979_s17, %s1981_s19  }
  0x2e   : > { %s1316_s25 = scalar_lea.hbm %s1973_s5, 2048 }
  0x2f   : > { %p1317_p5 = scmp.ne.s32.totalorder %s1973_s5, %s1316_s25  ;;  %p1323_p12 = scmp.lt.u32.totalorder %s1316_s25, %s1973_s5 }
  0x31   : > { %p1319_p10 = pnand %p1317_p5, %p1665_p8 }
  0x33   : > { %p1320_p11 = pneg %p1319_p10 }
  0x35   : > { %p1325_p13 = pnand %p1323_p12, %p1320_p11 }
  0x37   : > { %1328 = shalt.err (!%p1325_p13)
}
  0x38   : > { %s1329_s15 = scalar_lea.vmem %s1655_s18, 2048  ;;  %p1337_p7 = scmp.lt.s32.totalorder %s1655_s18, %s1655_s18 }
  0x39   : > { %p1330_p0 = scmp.ne.s32.totalorder %s1655_s18, %s1329_s15  ;;  %p1338_p9 = scmp.lt.s32.totalorder %s1329_s15, %s1329_s15 }
  0x3b   : > { %p1332_p2 = pnand %p1330_p0, %p1665_p8  ;;  %p1339_p5 = por %p1338_p9, %p1337_p7 }
  0x3d   : > { %p1333_p4 = pneg %p1332_p2 }
  0x3f   : > { %p1340_p10 = pnand %p1339_p5, %p1333_p4 }
  0x41   : > { %1343 = shalt.err (!%p1340_p10)
}
  0x42   : > { %s1545_s20 = smov 128   ;;  %s1546_s8 = smov 8  }
  0x43   : > { %1188 = dma.hbm_to_vmem [thread:$0]  (!%p1651_p6), %s1973_s5, 2048, %s1655_s18, [#allocation13], %s1545_s20, %s1545_s20, %s1546_s8  }
  0x44   : > { %s1547_s22 = smov [#allocation11]   ;;  %s1548_s25 = smov [#allocation14]  }
  0x45   : > { %s275_s23 = sshll.u32 %s1547_s22, 4  ;;  %s304_s26 = sshll.u32 %s1548_s25, 4  ;;  %s276_s23 = int_to_ptr.vmem [resolvable:$true] %s275_s23  ;;  %s1712_s26 = int_to_ptr.vmem [resolvable:$true] %s304_s26 }
  0x46   : > { %s1995_s3 = sld [smem:[#allocation23_spill]] }
  0x4c   : > { %s1344_s17 = scalar_lea.hbm %s1995_s3, 256 }
  0x4d   : > { %p1345_p11 = scmp.ne.s32.totalorder %s1995_s3, %s1344_s17  ;;  %p1351_p0 = scmp.lt.u32.totalorder %s1344_s17, %s1995_s3 }
  0x4f   : > { %p1347_p12 = pnand %p1345_p11, %p1665_p8 }
  0x51   : > { %p1348_p13 = pneg %p1347_p12 }
  0x53   : > { %p1353_p2 = pnand %p1351_p0, %p1348_p13 }
  0x55   : > { %1356 = shalt.err (!%p1353_p2)
}
  0x56   : > { %s1357_s20 = scalar_lea.vmem %s276_s23, 256  ;;  %p1365_p5 = scmp.lt.s32.totalorder %s276_s23, %s276_s23 }
  0x57   : > { %p1358_p4 = scmp.ne.s32.totalorder %s276_s23, %s1357_s20  ;;  %p1366_p10 = scmp.lt.s32.totalorder %s1357_s20, %s1357_s20 }
  0x59   : > { %p1360_p7 = pnand %p1358_p4, %p1665_p8  ;;  %p1367_p3 = por %p1366_p10, %p1365_p5 }
  0x5b   : > { %p1361_p9 = pneg %p1360_p7 }
  0x5d   : > { %p1368_p1 = pnand %p1367_p3, %p1361_p9 }
  0x5f   : > { %1371 = shalt.err (!%p1368_p1)
}
  0x60   : > { %s1996_s1 = smov 4   ;;  %s1997_s19 = smov 64  }
  0x61   : > { %1185 = dma.hbm_to_vmem [thread:$0]  (!%p1651_p6), %s1995_s3, 256, %s276_s23, [#allocation10], %s1997_s19, %s1997_s19, %s1996_s1  }
  0x62   : > { %s1372_s25 = scalar_lea.hbm %s1974_s6, 1024 }
  0x63   : > { %p1373_p11 = scmp.ne.s32.totalorder %s1974_s6, %s1372_s25  ;;  %p1379_p12 = scmp.lt.u32.totalorder %s1372_s25, %s1974_s6 }
  0x65   : > { %p1375_p1 = pnand %p1373_p11, %p1665_p8 }
  0x67   : > { %p1376_p3 = pneg %p1375_p1 }
  0x69   : > { %p1381_p13 = pnand %p1379_p12, %p1376_p3 }
  0x6b   : > { %1384 = shalt.err (!%p1381_p13)
}
  0x6c   : > { %s1385_s23 = scalar_lea.vmem %s1712_s26, 1024  ;;  %p1393_p7 = scmp.lt.s32.totalorder %s1712_s26, %s1712_s26 }
  0x6d   : > { %p1386_p0 = scmp.ne.s32.totalorder %s1712_s26, %s1385_s23  ;;  %p1394_p9 = scmp.lt.s32.totalorder %s1385_s23, %s1385_s23 }
  0x6f   : > { %p1388_p2 = pnand %p1386_p0, %p1665_p8  ;;  %p1395_p5 = por %p1394_p9, %p1393_p7 }
  0x71   : > { %p1389_p4 = pneg %p1388_p2 }
  0x73   : > { %p1396_p10 = pnand %p1395_p5, %p1389_p4 }
  0x75   : > { %1399 = shalt.err (!%p1396_p10)
}
  0x76   : > { %1191 = dma.hbm_to_vmem [thread:$0]  (!%p1651_p6), %s1974_s6, 1024, %s1712_s26, [#allocation13], %s1997_s19, %s1997_s19, %s1996_s1  }
  0x77   : > { %s318_s22 = sshll.u32 %s1975_s7, 4  ;;  %s319_s22 = int_to_ptr.vmem [resolvable:$true] %s318_s22 }
  0x78   : > { %s1400_s25 = scalar_lea.vmem %s319_s22, 16  ;;  %p1408_p12 = scmp.lt.s32.totalorder %s319_s22, %s319_s22 }
  0x79   : > { %p1401_p11 = scmp.ne.s32.totalorder %s319_s22, %s1400_s25  ;;  %p1409_p13 = scmp.lt.s32.totalorder %s1400_s25, %s1400_s25 }
  0x7b   : > { %p1403_p1 = pnand %p1401_p11, %p1665_p8  ;;  %p1410_p0 = por %p1409_p13, %p1408_p12 }
  0x7d   : > { %p1404_p3 = pneg %p1403_p1 }
  0x7f   : > { %p1411_p2 = pnand %p1410_p0, %p1404_p3 }
  0x81   : > { %1414 = shalt.err (!%p1411_p2)
}
  0x82   : > { %s1549_s14 = smov [#allocation15]   ;;  %s986_s24 = sadd.s32 4294967294, %s1539_s10  }
  0x83   : > { %1194 = dma.vmem_to_smem (!%p1651_p6), %s319_s22, 16, %s1549_s14, [#allocation8]  }
  0x84   : > { %s39_s26 = sadd.s32 1, %s1535_s9  ;;  %s48_s1 = sadd.s32 1, %s1527_s29 }
  0x85   : > { %p41_p8 = scmp.ge.s32.totalorder %s39_s26, 2  ;;  %p55_p4 = scmp.ne.s32.totalorder %s1527_s29, %s1523_s28 }
  0x86   : > { %p56_p7 = scmp.eq.s32.totalorder %s1539_s10, 0  ;;  %p61_p9 = scmp.ne.s32.totalorder %s1523_s28, %s1519_s27 }
  0x87   : > { %s2017_s26 = smov (%p41_p8, %s39_s26), 0  ;;  %p1999_p10 = scmp.ne.s32.totalorder %s1990_s12, 0 }
  0x88   : > { %p1778_p5 = por %p56_p7, %p55_p4  ;;  %s43_s15 = ssub.s32 %s1535_s9, %s2017_s26 }
  0x89   : > { %p1784_p6 = por %p1999_p10, %p61_p9  ;;  %s2001_s11 = sadd.s32 4294967295, %s1539_s10  }
  0x8a   : > { %p234_p11 = scmp.eq.s32.totalorder %s2001_s11, 1  ;;  %p46_p1 = scmp.eq.s32.totalorder %s43_s15, 0 }
  0x8b   : > { %p240_p3 = scmp.eq.s32.totalorder %s986_s24, 1  ;;  %p1208_p13 = scmp.lt.s32.totalorder %s1539_s10, 2 }
  0x8c   : > { %p1792_p12 = por %p234_p11, %p55_p4  ;;  %s329_s8 = sand.u32 1, %s1527_s29  }
  0x8d   : > { %s1798_s23 = scalar_select %p46_p1, %s1527_s29, %s48_s1  }
  0x8e   : > { %s2002_s18 = scalar_select %p1792_p12, 1, 0 }
  0x8f   : > { %p1800_p0 = por %p240_p3, %p61_p9  ;;  %s994_s17 = sshll.u32 %s329_s8, 2 }
  0x90   : > { %s995_s21 = sshll.u32 %s1535_s9, 6  ;;  %s333_s24 = scalar_lea.vmem [#allocation5], %s994_s17 }
  0x91   : > { %s2003_s20 = scalar_select %p1800_p0, 1, 0 }
  0x92   : > { %s1809_s14 = scalar_lea.hbm %s1968_s0, %s995_s21  ;;  %s341_s15 = sshll.u32 %s333_s24, 4  ;;  %s1811_s15 = int_to_ptr.vmem [resolvable:$true] %s341_s15 }
  0x93   : > { %p1815_p2 = pnand %p1208_p13, %p1778_p5  ;;  %s330_s11 = scalar_lea.sflag [#allocation6], %s329_s8 }
  0x94   : > { %s1415_s3 = scalar_lea.hbm %s1809_s14, 64  ;;  %s1420_s22 = scalar_lea.hbm %s1968_s0, 128 }
  0x95   : > { %p1416_p8 = scmp.ne.s32.totalorder %s1809_s14, %s1415_s3  ;;  %p1417_p4 = pneg %p1815_p2 }
  0x96   : > { %p1421_p5 = scmp.lt.u32.totalorder %s1809_s14, %s1968_s0  ;;  %p1422_p10 = scmp.lt.u32.totalorder %s1420_s22, %s1415_s3 }
  0x97   : > { %p1418_p7 = pnand %p1417_p4, %p1416_p8  ;;  %p1424_p1 = scmp.lt.u32.totalorder %s1415_s3, %s1809_s14 }
  0x98   : > { %p1423_p11 = por %p1422_p10, %p1421_p5 }
  0x99   : > { %p1419_p9 = pneg %p1418_p7 }
  0x9a   : > { %p1425_p3 = por %p1424_p1, %p1423_p11 }
  0x9c   : > { %p1426_p13 = pnand %p1425_p3, %p1419_p9 }
  0x9e   : > { %1429 = shalt.err (!%p1426_p13)
}
  0x9f   : > { %s1430_s8 = scalar_lea.vmem %s1811_s15, 64  ;;  %s1550_s24 = smov [#allocation5]  }
  0xa0   : > { %p1431_p8 = scmp.ne.s32.totalorder %s1811_s15, %s1430_s8  ;;  %s1435_s17 = sshll.u32 %s1550_s24, 4  ;;  %s1436_s17 = int_to_ptr.vmem [resolvable:$false] %s1435_s17 }
  0xa1   : > { %s1437_s21 = scalar_lea.vmem %s1436_s17, 128  ;;  %p1438_p12 = scmp.lt.s32.totalorder %s1811_s15, %s1436_s17 }
  0xa2   : > { %p1433_p7 = pnand %p1431_p8, %p1417_p4  ;;  %p1439_p5 = scmp.lt.s32.totalorder %s1437_s21, %s1430_s8 }
  0xa4   : > { %p1434_p0 = pneg %p1433_p7  ;;  %p1440_p10 = por %p1439_p5, %p1438_p12 }
  0xa6   : > { %p1441_p11 = pnand %p1440_p10, %p1434_p0 }
  0xa8   : > { %1444 = shalt.err (!%p1441_p11)
}
  0xa9   : > { %1198 = dma.hbm_to_vmem [thread:$0]  (!%p1815_p2), %s1809_s14, 64, %s1811_s15, %s330_s11  }
  0xaa   : > { %p2005_p9 = scmp.ne.s32.totalorder %s1991_s13, 0 }
  0xab   : > { %s1847_s3 = sand.u32 (!%p2005_p9), 1, %s1523_s28  }
  0xac   : > { %350 = sbr.rel (%p2005_p9) target bundleno = 879 (0x36f), region = 52  ;;  %s997_s22 = sshll.u32 (!%p2005_p9), %s1847_s3, 2 }
  0xad   : > { %s353_s16 = scalar_lea.sflag (!%p2005_p9), [#allocation6], %s1847_s3  ;;  %s356_s25 = scalar_lea.vmem (!%p2005_p9), [#allocation5], %s997_s22 }
  0xb3   : > { %1498 = dma.done.wait (%p1784_p6), %s353_s16, 64  }
  0xb4   : > { %1500 = vsyncadd (%p1784_p6), %s353_s16, 4294967232  ;;  %p2006_p12 = scmp.ne.s32.totalorder %s1990_s12, 0 }
  0xb6   : > { %1502 = dma.done.wait (%p2006_p12), [#allocation10], 512  }
  0xb7   : > { %1504 = vsyncadd (%p2006_p12), [#allocation10], 4294966784 }
  0xb8   : > { %1506 = dma.done.wait (%p2006_p12), [#allocation13], 3072  }
  0xb9   : > { %1508 = vsyncadd (%p2006_p12), [#allocation13], 4294964224 }
  0xba   : > { %1510 = dma.done.wait (%p2006_p12), [#allocation8], 16  }
  0xbb   : > { %1512 = vsyncadd (%p2006_p12), [#allocation8], 4294967280 }
  0xbc   : > { %381 = sfence }
  0xbd   : > { %v1276_v0 = vld [vmem:[#allocation9] sm:$0xff]   ;;  %v1551_v1 = vmov 0.0   ;;  %v1277_v2 = vld [vmem:[#allocation9 + $0x8] sm:$0xff]   ;;  %vm1552_vm0 = vmmov 0   ;;  %v411_v5 = vld [vmem:[%s356_s25] sm:$0xf] }
  0xbe   : > { %1060 = vmatprep.subr.bf16.mxu0 %v1551_v1  ;;  %1068 = vmatprep.subr.bf16.mxu1 %v1551_v1  ;;  %v544_v3 = vld [vmem:[#allocation12] sm:$0xff]  ;;  %v545_v4 = vld [vmem:[#allocation12 + $0x8] sm:$0xff]  ;;  %vm435_vm1 = vcmask 261120   ;;  %v546_v7 = vld [vmem:[#allocation12 + $0x10] sm:$0xff]  ;;  %v1553_v8 = vmov 0.0|0.0   ;;  %vm811_vm5 = vcmask 1040384  }
  0xbf   : > { %1061 = vmatpush3.bf16.msra.mxu0 %v1276_v0  ;;  %1064 = vmatprep.mubr.msk.bf16.mxu0 %vm1552_vm0, %v1551_v1  ;;  %v1132_v6 = vpack.c.bf16 %v545_v4, %v544_v3  ;;  %v547_v9 = vld [vmem:[#allocation12 + $0x18] sm:$0xff]  ;;  %v548_v10 = vld [vmem:[#allocation12 + $0x20] sm:$0xff]  ;;  %v549_v11 = vld [vmem:[#allocation12 + $0x28] sm:$0xff]  ;;  %v1554_v52 = vmov 1.0|1.0   ;;  %vm813_vm6 = vcmask 1041408  }
  0xc0   : > { %1062 = vmatprep.subr.bf16.mxu0 %v1551_v1  ;;  %1072 = vmatprep.mubr.msk.bf16.mxu1 %vm1552_vm0, %v1551_v1  ;;  %v1135_v12 = vpack.c.bf16 %v547_v9, %v546_v7  ;;  %v1138_v13 = vpack.c.bf16 %v549_v11, %v548_v10  ;;  %v550_v14 = vld [vmem:[#allocation12 + $0x30] sm:$0xff]  ;;  %v551_v15 = vld [vmem:[#allocation12 + $0x38] sm:$0xff]  ;;  %v552_v17 = vld [vmem:[#allocation12 + $0x40] sm:$0xff]  ;;  %vm815_vm7 = vcmask 1042432   ;;  %vm817_vm8 = vcmask 1043456   ;;  %s1900_s15 = sld [smem:[#allocation15]] }
  0xc1   : > { %v1141_v16 = vpack.c.bf16 %v551_v15, %v550_v14  ;;  %v553_v18 = vld [vmem:[#allocation12 + $0x48] sm:$0xff]  ;;  %v554_v20 = vld [vmem:[#allocation12 + $0x50] sm:$0xff]  ;;  %v555_v21 = vld [vmem:[#allocation12 + $0x58] sm:$0xff]  ;;  %s1902_s1 = sld [smem:[#allocation15 + $0x1]]  ;;  %vm819_vm9 = vcmask 1044480   ;;  %vm821_vm10 = vcmask 1045504  }
  0xc2   : > { %v1144_v19 = vpack.c.bf16 %v553_v18, %v552_v17  ;;  %v1147_v22 = vpack.c.bf16 %v555_v21, %v554_v20  ;;  %v556_v23 = vld [vmem:[#allocation12 + $0x60] sm:$0xff]  ;;  %v557_v24 = vld [vmem:[#allocation12 + $0x68] sm:$0xff]  ;;  %v558_v26 = vld [vmem:[#allocation12 + $0x70] sm:$0xff]  ;;  %s1003_s11 = sshll.u32 %s1847_s3, 3  ;;  %vm823_vm11 = vcmask 1046528   ;;  %s1023_s8 = sshll.u32 %s1531_s30, 7 }
  0xc3   : > { %1063 = vmatpush3.bf16.msra.mxu0 %v1277_v2  ;;  %v1150_v25 = vpack.c.bf16 %v557_v24, %v556_v23  ;;  %v559_v27 = vld [vmem:[#allocation12 + $0x78] sm:$0xff]  ;;  %v1278_v29 = vld [vmem:[#allocation11] sm:$0xff]   ;;  %v1280_v31 = vld [vmem:[#allocation14] sm:$0xff]   ;;  %s409_s24 = scalar_lea.vmem [#allocation16], %s1003_s11  ;;  %s2007_s16 = sld [smem:[#allocation24_spill]] }
  0xc4   : > { %1131 = vmatprep.subr.bf16.mxu0 %v1553_v8  ;;  %v1153_v28 = vpack.c.bf16 %v559_v27, %v558_v26  ;;  %1069 = vmatpush3.bf16.msra.mxu1 %v1278_v29  ;;  %v1279_v30 = vld [vmem:[#allocation11 + $0x8] sm:$0xff]   ;;  %v1281_v32 = vld [vmem:[#allocation14 + $0x8] sm:$0xff]   ;;  %v1282_v33 = vld [vmem:[#allocation14 + $0x10] sm:$0xff]   ;;  %s855_s17 = sshll.u32 %s409_s24, 4  ;;  %s841_s12 = scalar_lea.sflag [#allocation7], %s1847_s3  ;;  %s1921_s17 = int_to_ptr.vmem [resolvable:$true] %s855_s17 }
  0xc5   : > { %1070 = vmatprep.subr.bf16.mxu1 %v1551_v1  ;;  %v1283_v34 = vld [vmem:[#allocation14 + $0x18] sm:$0xff]   ;;  %v1284_v35 = vld [vmem:[#allocation14 + $0x20] sm:$0xff]   ;;  %v1285_v36 = vld [vmem:[#allocation14 + $0x28] sm:$0xff]   ;;  %s1445_s13 = scalar_lea.vmem %s1921_s17, 128  ;;  %p2008_p0 = scmp.ne.s32.totalorder %s2002_s18, 0 }
  0xc6   : > { %1065 = vmatmul.mubr.msk.bf16.vlgmr.msra.gmra.mrb[0].mxu0 %vm435_vm1, %v411_v5  ;;  %v1286_v37 = vld [vmem:[#allocation14 + $0x30] sm:$0xff]   ;;  %v1004_v38 = vld [vmem:[%s1970_s2] ss:$0 sm:$0xff]  ;;  %p1446_p6 = scmp.ne.s32.totalorder %s1921_s17, %s1445_s13  ;;  %s1555_s30 = smov [#allocation16]  }
  0xc7   : > { %1133 = vmatpush3.bf16.msra.mxu0 %v1132_v6  ;;  %1108 = vmatprep.mubr.msk.f32.mxu0 %vm1552_vm0, %v1551_v1  ;;  %v1287_v45 = vld [vmem:[#allocation14 + $0x38] sm:$0xff]   ;;  %s1449_s19 = sshll.u32 %s1555_s30, 4  ;;  %s1450_s19 = int_to_ptr.vmem [resolvable:$false] %s1449_s19 }
  0xc8   : > { %1134 = vmatprep.subr.bf16.mxu0 %v1553_v8  ;;  %1071 = vmatpush3.bf16.msra.mxu1 %v1279_v30  ;;  %v1008_v53 = vld [vmem:[%s1972_s4] ss:$0 sm:$0xff]  ;;  %p1447_p2 = pnand %p1446_p6, %p2008_p0  ;;  %s1451_s14 = scalar_lea.vmem %s1450_s19, 256 }
  0xc9   : > { %1111 = vmatprep.subr.bf16.mxu1 %v1551_v1  ;;  %s1919_s25 = scalar_lea.hbm %s2007_s16, %s1023_s8  ;;  %p1452_p1 = scmp.lt.s32.totalorder %s1921_s17, %s1450_s19 }
  0xca   : > { %p1448_p4 = pneg %p1447_p2  ;;  %p1453_p3 = scmp.lt.s32.totalorder %s1451_s14, %s1445_s13 }
  0xcb   : > { %1136 = vmatpush3.bf16.msra.mxu0 %v1135_v12  ;;  %1073 = vmatmul.mubr.msk.bf16.vlgmr.msra.gmra.mrb[0].mxu1 %vm435_vm1, %v411_v5 }
  0xcc   : > { %1137 = vmatprep.subr.bf16.mxu0 %v1553_v8  ;;  %1112 = vmatpush3.bf16.msra.mxu1 %v1280_v31  ;;  %p1454_p13 = por %p1453_p3, %p1452_p1 }
  0xcd   : > { %1127 = vmatprep.mubr.msk.bf16.mxu1 %vm1552_vm0, %v1551_v1  ;;  %1113 = vmatprep.subr.bf16.mxu1 %v1551_v1 }
  0xce   : > { %p1455_p8 = pnand %p1454_p13, %p1448_p4 }
  0xcf   : > { %1139 = vmatpush3.bf16.msra.mxu0 %v1138_v13 }
  0xd0   : > { %1140 = vmatprep.subr.bf16.mxu0 %v1553_v8  ;;  %1114 = vmatpush3.bf16.msra.mxu1 %v1281_v32  ;;  %v825_v32 = vstv %s1900_s15 }
  0xd1   : > { %1115 = vmatprep.subr.bf16.mxu1 %v1551_v1 }
  0xd3   : > { %1142 = vmatpush3.bf16.msra.mxu0 %v1141_v16 }
  0xd4   : > { %1143 = vmatprep.subr.bf16.mxu0 %v1553_v8  ;;  %1116 = vmatpush3.bf16.msra.mxu1 %v1282_v33  ;;  %v834_v33 = vstv %s1902_s1 }
  0xd5   : > { %1117 = vmatprep.subr.bf16.mxu1 %v1551_v1 }
  0xd7   : > { %1145 = vmatpush3.bf16.msra.mxu0 %v1144_v19 }
  0xd8   : > { %1146 = vmatprep.subr.bf16.mxu0 %v1553_v8  ;;  %1118 = vmatpush3.bf16.msra.mxu1 %v1283_v34 }
  0xd9   : > { %1119 = vmatprep.subr.bf16.mxu1 %v1551_v1 }
  0xdb   : > { %1148 = vmatpush3.bf16.msra.mxu0 %v1147_v22 }
  0xdc   : > { %1149 = vmatprep.subr.bf16.mxu0 %v1553_v8  ;;  %1120 = vmatpush3.bf16.msra.mxu1 %v1284_v35 }
  0xdd   : > { %1121 = vmatprep.subr.bf16.mxu1 %v1551_v1 }
  0xdf   : > { %1151 = vmatpush3.bf16.msra.mxu0 %v1150_v25 }
  0xe0   : > { %1152 = vmatprep.subr.bf16.mxu0 %v1553_v8  ;;  %1122 = vmatpush3.bf16.msra.mxu1 %v1285_v36 }
  0xe1   : > { %1123 = vmatprep.subr.bf16.mxu1 %v1551_v1 }
  0xe3   : > { %1154 = vmatpush3.bf16.msra.mxu0 %v1153_v28 }
  0xe4   : > { %1124 = vmatpush3.bf16.msra.mxu1 %v1286_v37 }
  0xe5   : > { %1125 = vmatprep.subr.bf16.mxu1 %v1551_v1 }
  0xe8   : > { %1126 = vmatpush3.bf16.msra.mxu1 %v1287_v45 }
 0x199   : > { %v473_v39 = vpop.f32.mrb[0].mxu0 }
 0x19a   : > { %v474_v40 = vadd.f32 %v1004_v38, %v473_v39  ;;  %v1066_v41 = vpop.f32.mrb[1].mxu0 }
 0x19b   : > { %v476_v42 = vpop.f32.mrb[2].mxu0 }
 0x19c   : > { %v479_v43 = vmax.f32 %v474_v40, 0.0  ;;  %v1067_v44 = vpop.f32.mrb[3].mxu0 }
 0x19e   : > { %1109 = vmatmul.mubr.f32.vlgmr.msra.gmra.mrb[4].mxu0 %v479_v43  ;;  %v537_v46 = vpop.f32.mrb[0].mxu1 }
 0x19f   : > { %v1074_v47 = vpop.f32.mrb[1].mxu1  ;;  %v538_v54 = vadd.f32 %v1008_v53, %v537_v46 }
 0x1a0   : > { %v540_v48 = vpop.f32.mrb[2].mxu1 }
 0x1a1   : > { %v1075_v49 = vpop.f32.mrb[3].mxu1  ;;  %v543_v55 = vmax.f32 %v538_v54, 0.0 }
 0x1a3   : > { %v756_v57 = vrot.slane %v543_v55, 7 }
 0x1a5   : > { %v767_v63 = vrot.slane %v756_v57, 7  ;;  %v827_v3 = vsel %vm811_vm5, %v543_v55, %v756_v57 }
 0x271   : > { %v626_v50 = vpop.f32.mrb[4].mxu0 }
 0x272   : > { %vm630_vm2 = vcmp.gt.f32.partialorder %v626_v50, 0.5  ;;  %v1110_v51 = vpop.f32.mrb[5].mxu0 }
 0x273   : > { %vm1026_vm3 = vmpackc.low %vm630_vm2, %vm630_vm2 }
 0x274   : > { %1128 = vmatmul.mubr.msk.bf16.vlgmr.msra.gmra.mrb[4].mxu1 %vm1026_vm3, %v1554_v52 }
 0x347   : > { %v746_v56 = vpop.f32.mrb[4].mxu1 }
 0x348   : > { %vm752_vm4 = vcmp.gt.f32.partialorder %v746_v56, 0.5  ;;  %v1129_v58 = vpop.f32.mrb[5].mxu1 }
 0x349   : > { %v749_v59 = vpop.f32.mrb[6].mxu1  ;;  %v762_v60 = vsel %vm752_vm4, %v543_v55, %v756_v57 }
 0x34a   : > { %v1130_v61 = vpop.f32.mrb[7].mxu1  ;;  %v764_v62 = vrot.slane %v762_v60, 7  ;;  %v812_v0 = vsel %vm811_vm5, %v543_v55, %v762_v60 }
 0x34c   : > { %v769_v1 = vsel %vm752_vm4, %v764_v62, %v767_v63  ;;  %v770_v2 = vsel %vm752_vm4, %v543_v55, %v764_v62 }
 0x34d   : > { %v772_v4 = vrot.slane %v770_v2, 7  ;;  %v775_v5 = vrot.slane %v769_v1, 7  ;;  %v814_v6 = vsel %vm813_vm6, %v812_v0, %v770_v2  ;;  %v828_v7 = vsel %vm813_vm6, %v827_v3, %v769_v1 }
 0x34f   : > { %v777_v8 = vsel %vm752_vm4, %v772_v4, %v775_v5  ;;  %v778_v9 = vsel %vm752_vm4, %v543_v55, %v772_v4 }
 0x350   : > { %v780_v10 = vrot.slane %v778_v9, 7  ;;  %v783_v11 = vrot.slane %v777_v8, 7  ;;  %v816_v12 = vsel %vm815_vm7, %v814_v6, %v778_v9  ;;  %v829_v13 = vsel %vm815_vm7, %v828_v7, %v777_v8 }
 0x352   : > { %v785_v14 = vsel %vm752_vm4, %v780_v10, %v783_v11  ;;  %v786_v15 = vsel %vm752_vm4, %v543_v55, %v780_v10 }
 0x353   : > { %v788_v16 = vrot.slane %v786_v15, 7  ;;  %v791_v17 = vrot.slane %v785_v14, 7  ;;  %v818_v18 = vsel %vm817_vm8, %v816_v12, %v786_v15  ;;  %v830_v19 = vsel %vm817_vm8, %v829_v13, %v785_v14 }
 0x355   : > { %v793_v20 = vsel %vm752_vm4, %v788_v16, %v791_v17  ;;  %v794_v21 = vsel %vm752_vm4, %v543_v55, %v788_v16 }
 0x356   : > { %v796_v22 = vrot.slane %v794_v21, 7  ;;  %v799_v23 = vrot.slane %v793_v20, 7  ;;  %v820_v24 = vsel %vm819_vm9, %v818_v18, %v794_v21  ;;  %v831_v25 = vsel %vm819_vm9, %v830_v19, %v793_v20 }
 0x358   : > { %v801_v26 = vsel %vm752_vm4, %v796_v22, %v799_v23  ;;  %v802_v27 = vsel %vm752_vm4, %v543_v55, %v796_v22 }
 0x359   : > { %v804_v28 = vrot.slane %v802_v27, 7  ;;  %v807_v29 = vrot.slane %v801_v26, 7  ;;  %v822_v30 = vsel %vm821_vm10, %v820_v24, %v802_v27  ;;  %v832_v31 = vsel %vm821_vm10, %v831_v25, %v801_v26 }
 0x35b   : > { %v809_v34 = vsel %vm752_vm4, %v804_v28, %v807_v29  ;;  %v810_v35 = vsel %vm752_vm4, %v543_v55, %v804_v28 }
 0x35c   : > { %v824_v36 = vsel %vm823_vm11, %v822_v30, %v810_v35  ;;  %v833_v37 = vsel %vm823_vm11, %v832_v31, %v809_v34 }
 0x35d   : > { %v826_v38 = vmul.f32 %v825_v32, %v824_v36  ;;  %v835_v39 = vmul.f32 %v834_v33, %v833_v37 }
 0x35f   : > { %v836_v40 = vadd.f32 %v835_v39, %v826_v38 }
 0x361   : > { %837 = vst [vmem:[%s409_s24] sm:$0xff] %v836_v40 }
 0x362   : > { %1458 = shalt.err (!%p1455_p8)
}
 0x363   : > { %s1459_s3 = scalar_lea.hbm %s1919_s25, 128  ;;  %s1463_s11 = scalar_lea.hbm %s2007_s16, 256 }
 0x364   : > { %p1460_p7 = scmp.ne.s32.totalorder %s1919_s25, %s1459_s3  ;;  %p1464_p11 = scmp.lt.u32.totalorder %s1919_s25, %s2007_s16 }
 0x365   : > { %p1465_p9 = scmp.lt.u32.totalorder %s1463_s11, %s1459_s3  ;;  %p1467_p6 = scmp.lt.u32.totalorder %s1459_s3, %s1919_s25 }
 0x366   : > { %p1461_p5 = pnand %p1460_p7, %p2008_p0 }
 0x367   : > { %p1466_p12 = por %p1465_p9, %p1464_p11 }
 0x368   : > { %p1462_p10 = pneg %p1461_p5 }
 0x369   : > { %p1468_p2 = por %p1467_p6, %p1466_p12 }
 0x36b   : > { %p1469_p4 = pnand %p1468_p2, %p1462_p10 }
 0x36d   : > { %1472 = shalt.err (!%p1469_p4)
}
 0x36e   : > { %1177 = dma.vmem_to_hbm [thread:$0]  (%p2008_p0), %s1921_s17, 128, %s1919_s25, %s841_s12  }
 0x36f PF: > { %s867_s21 = sand.u32 1, %s1519_s27   ;;  %p2009_p1 = scmp.ne.s32.totalorder %s2003_s20, 0 }
 0x370   : > { %p2010_p3 = scmp.ge.s32.totalorder %s1539_s10, 2  ;;  %s868_s22 = scalar_lea.sflag [#allocation7], %s867_s21 }
 0x372   : > { %p1200_p13 = pnand %p2010_p3, %p2009_p1 }
 0x374   : > { %1514 = dma.done.wait (!%p1200_p13), %s868_s22, 128  }
 0x375   : > { %1516 = vsyncadd (!%p1200_p13), %s868_s22, 4294967168  ;;  %s27_s10 = sadd.s32 1, %s1539_s10   ;;  %s2011_s27 = smov %s1523_s28 }
 0x376   : > { %p24_p8 = scmp.ge.s32.totalorder %s27_s10, 4   ;;  %s2012_s28 = smov %s1527_s29 }
 0x377   : > { %s2013_s29 = smov %s1798_s23  ;;  %s2014_s30 = smov %s1535_s9 }
 0x378   : > { %s2015_s9 = smov %s2017_s26  ;;  %26 = sbr.rel (!%p24_p8) target bundleno = 13 (0xd), region = 118 }
 0x37f   :  { %873 = vsyncpa [#allocation6], 1 }
 0x380   :  { %875 = vsyncpa [#allocation6 + $0x1], 1 }
 0x381   :  { %876 = vsyncpa [#allocation10], 1 }
 0x382   :  { %877 = vsyncpa [#allocation13], 1 }
 0x383   :  { %878 = vsyncpa [#allocation7], 1 }
 0x384   :  { %880 = vsyncpa [#allocation7 + $0x1], 1 }
 0x385   :  { %881 = vsyncpa [#allocation8], 1 }
 0x386   :  { %883 = vsyncpa [#allocation8 + $0x1], 1 }

</bundles_post_ra>
